<compile_context>
chip_gen: v5e
topology: v5e:2x2
jax: 0.10.0
libtpu: 0.0.40
codegen_flags: <defaults>
</compile_context>

<pallas_src>
from functools import partial

import jax
import jax.numpy as jnp
from jax import lax
from jax.experimental import pallas as pl
from jax.experimental.pallas import tpu as pltpu

_VMEM_LIMIT = 32 * 1024 * 1024  # scoped-VMEM budget, safe on v5e/v6e/v7x


def _round_up(v, m):
    return (v + m - 1) // m * m


def _pick_tile(n, max_tile):
    """Largest multiple of 128 that divides n and is <= max_tile."""
    assert n % 128 == 0, f"positions (d*h*w={n}) must be a multiple of 128"
    best = 128
    t = 256
    while t <= min(n, max_tile):
        if n % t == 0:
            best = t
        t += 128
    return best


# ----------------------------------------------------------------------------
# Kernel 1: key / value projections (channels-first), tiled over positions.
# Global-feature halves kg/vg arrive as tiny (ct_pad, d) blocks; the per-tile
# plane one-hot is built in-kernel from iota (no HBM (d, n) matrix).
# ----------------------------------------------------------------------------
def _kv_proj_kernel(x_ref, kg_ref, vg_ref,
                    wk1x_ref, bk1_ref, wk2_ref, bk2_ref, wvx_ref, bv_ref,
                    k_ref, v_ref, *, tn, hw):
    ti = pl.program_id(1)
    x = x_ref[0]                                                   # (c, tn)
    d = kg_ref.shape[2]

    # one-hot plane membership for this tile, built with comparisons only
    lane = lax.broadcasted_iota(jnp.int32, (d, tn), 1)
    row = lax.broadcasted_iota(jnp.int32, (d, tn), 0)
    gpos = ti * tn + lane                                          # global position
    lo = row * hw
    e = jnp.logical_and(gpos >= lo, gpos < lo + hw).astype(jnp.float32)

    kgb = jnp.dot(kg_ref[0], e, preferred_element_type=jnp.float32)   # (ct_pad, tn)
    vgb = jnp.dot(vg_ref[0], e, preferred_element_type=jnp.float32)

    k1 = jnp.dot(wk1x_ref[...], x, preferred_element_type=jnp.float32) + kgb + bk1_ref[...]
    k1 = jnp.maximum(k1, 0.0)
    k = jnp.dot(wk2_ref[...], k1, preferred_element_type=jnp.float32) + bk2_ref[...]
    k_ref[0] = jnp.maximum(k, 0.0)

    v = jnp.dot(wvx_ref[...], x, preferred_element_type=jnp.float32) + vgb + bv_ref[...]
    v_ref[0] = jnp.maximum(v, 0.0)


# ----------------------------------------------------------------------------
# Kernel 2: flash-style self-attention + fused query/out projections.
# Softmax scale is pre-folded into wq2/bq2 in the wrapper.
# ----------------------------------------------------------------------------
def _flash_attn_kernel(xq_ref, k_ref, v_ref,
                       wq1_ref, bq1_ref, wq2_ref, bq2_ref, wo_ref, bo_ref,
                       o_ref, q_sc, m_sc, l_sc, acc_sc):
    kv = pl.program_id(2)

    @pl.when(kv == 0)
    def _():
        xq = xq_ref[0]                                              # (c, tq)
        q1 = jnp.dot(wq1_ref[...], xq, preferred_element_type=jnp.float32) + bq1_ref[...]
        q1 = jnp.maximum(q1, 0.0)
        q2 = jnp.dot(wq2_ref[...], q1, preferred_element_type=jnp.float32) + bq2_ref[...]
        q_sc[...] = jnp.maximum(q2, 0.0)                            # (ct_pad, tq), scale folded in
        m_sc[...] = jnp.full(m_sc.shape, -jnp.inf, jnp.float32)
        l_sc[...] = jnp.zeros_like(l_sc)
        acc_sc[...] = jnp.zeros_like(acc_sc)

    q = q_sc[...]                                                    # (ct_pad, tq)
    k = k_ref[0]                                                     # (ct_pad, tk)
    v = v_ref[0]                                                     # (ct_pad, tk)

    # sim^T tile: contract channel (sublane) dims directly -> no k.T emitted.
    s_t = lax.dot_general(k, q, (((0,), (0,)), ((), ())),
                          preferred_element_type=jnp.float32)        # (tk, tq)

    m_prev = m_sc[...]                                               # (1, tq)
    m_new = jnp.maximum(m_prev, jnp.max(s_t, axis=0, keepdims=True))
    alpha = jnp.exp(m_prev - m_new)
    p = jnp.exp(s_t - m_new)                                         # (tk, tq)
    l_sc[...] = alpha * l_sc[...] + jnp.sum(p, axis=0, keepdims=True)
    acc_sc[...] = alpha * acc_sc[...] + jnp.dot(v, p, preferred_element_type=jnp.float32)
    m_sc[...] = m_new

    @pl.when(kv == pl.num_programs(2) - 1)
    def _():
        ctx = acc_sc[...] * pl.reciprocal(l_sc[...], approx=True)     # (ct_pad, tq)
        out = jnp.dot(wo_ref[...], ctx, preferred_element_type=jnp.float32) + bo_ref[...]
        o_ref[0] = jnp.maximum(out, 0.0)                               # (c, tq)


# ----------------------------------------------------------------------------
# Kernel 3: bottleneck Conv3d(3x3x3, pad=1) + folded BN3d + LeakyReLU(0.1).
# One padded d-plane arrives per grid step (single HBM read per plane); a
# 4-slot VMEM ring carries the halo planes across the "arbitrary" plane axis.
# Taps are grouped per-kd into a single (c, 9*2c) x (9*2c, hp) matmul.
# ----------------------------------------------------------------------------
def _bottleneck_kernel(pin_ref, wconv_ref, bias_ref, o_ref, ring_ref, *, width, hp):
    s = pl.program_id(1)
    ring_ref[s & 3] = pin_ref[0]                      # store plane s into ring slot s%4

    @pl.when(s >= 2)
    def _():
        wp = width + 2
        c_out = o_ref.shape[1]
        acc = jnp.zeros((c_out, hp), jnp.float32)
        for kd in range(3):
            # plane (s-2+kd) lives in slot (s-2+kd)%4 == (s+2+kd)&3
            plane = ring_ref[(s + 2 + kd) & 3]                       # (2c, nf)
            stacked = jnp.concatenate(
                [plane[:, kh * wp + kw: kh * wp + kw + hp]
                 for kh in range(3) for kw in range(3)], axis=0)     # (9*2c, hp)
            acc = acc + jnp.dot(wconv_ref[kd], stacked,
                                preferred_element_type=jnp.float32)
        y = acc + bias_ref[...]
        o_ref[0] = jnp.where(y > 0.0, y, 0.1 * y)                    # LeakyReLU(0.1)


# ----------------------------------------------------------------------------
# Forward wrapper
# ----------------------------------------------------------------------------
def disparity_level_context(x, params, *, transform_channels):
    b, c, d, h, w = x.shape
    hw = h * w
    n = d * hw
    ct_pad = params["wq1"].shape[0]
    scale = float(transform_channels) ** -0.5

    cp2 = pltpu.CompilerParams(dimension_semantics=("parallel", "parallel"),
                               vmem_limit_bytes=_VMEM_LIMIT)
    cp3 = pltpu.CompilerParams(dimension_semantics=("parallel", "parallel", "arbitrary"),
                               vmem_limit_bytes=_VMEM_LIMIT)
    cpb = pltpu.CompilerParams(dimension_semantics=("parallel", "arbitrary"),
                               vmem_limit_bytes=_VMEM_LIMIT)

    def _w_spec(arr):
        nd = arr.ndim
        return pl.BlockSpec(arr.shape, lambda *_: (0,) * nd)

    # --- stage 1: global avg-pool + global-feature projections (tiny; XLA) ---
    pooled = jnp.mean(x, axis=(3, 4))                                  # (b, c, d)
    kg = jnp.einsum("kc,bcd->bkd", params["wk1g"], pooled)             # (b, ct_pad, d)
    vg = jnp.einsum("kc,bcd->bkd", params["wvg"], pooled)

    x_flat = x.reshape(b, c, n)                                        # free, channels-first

    # --- stage 2a: K / V projections (tiled over positions) ---
    tn = _pick_tile(n, 1024)
    kv_names = ["wk1x", "bk1", "wk2", "bk2", "wvx", "bv"]
    k_arr, v_arr = pl.pallas_call(
        partial(_kv_proj_kernel, tn=tn, hw=hw),
        out_shape=(jax.ShapeDtypeStruct((b, ct_pad, n), jnp.float32),
                   jax.ShapeDtypeStruct((b, ct_pad, n), jnp.float32)),
        grid=(b, n // tn),
        in_specs=[pl.BlockSpec((1, c, tn), lambda bi, ti: (bi, 0, ti)),
                  pl.BlockSpec((1, ct_pad, d), lambda bi, ti: (bi, 0, 0)),
                  pl.BlockSpec((1, ct_pad, d), lambda bi, ti: (bi, 0, 0))]
                 + [_w_spec(params[nm]) for nm in kv_names],
        out_specs=(pl.BlockSpec((1, ct_pad, tn), lambda bi, ti: (bi, 0, ti)),
                   pl.BlockSpec((1, ct_pad, tn), lambda bi, ti: (bi, 0, ti))),
        compiler_params=cp2,
    )(x_flat, kg, vg, *[params[nm] for nm in kv_names])

    # --- stage 2b: flash attention + fused query / out projections ---
    tq = _pick_tile(n, 1024)          # large q tile: fewer K/V re-reads from HBM
    tk = _pick_tile(n, 512)           # bounded kv tile: caps (tk, tq) intermediates
    wq2s = params["wq2"] * scale      # fold softmax scale into the query projection
    bq2s = params["bq2"] * scale
    attn_ws = [params["wq1"], params["bq1"], wq2s, bq2s, params["wo"], params["bo"]]
    feats = pl.pallas_call(
        _flash_attn_kernel,
        out_shape=jax.ShapeDtypeStruct((b, c, n), jnp.float32),
        grid=(b, n // tq, n // tk),
        in_specs=[pl.BlockSpec((1, c, tq), lambda bi, qi, ki: (bi, 0, qi)),
                  pl.BlockSpec((1, ct_pad, tk), lambda bi, qi, ki: (bi, 0, ki)),
                  pl.BlockSpec((1, ct_pad, tk), lambda bi, qi, ki: (bi, 0, ki))]
                 + [_w_spec(a) for a in attn_ws],
        out_specs=pl.BlockSpec((1, c, tq), lambda bi, qi, ki: (bi, 0, qi)),
        scratch_shapes=[pltpu.VMEM((ct_pad, tq), jnp.float32),   # q tile
                        pltpu.VMEM((1, tq), jnp.float32),        # running max
                        pltpu.VMEM((1, tq), jnp.float32),        # running sum
                        pltpu.VMEM((ct_pad, tq), jnp.float32)],  # output accumulator
        compiler_params=cp3,
    )(x_flat, k_arr, v_arr, *attn_ws)

    # --- stage 3: bottleneck 3x3x3 conv + BN + LeakyReLU (halo'd d-planes) ---
    feats5 = feats.reshape(b, c, d, h, w)                              # free
    xcat = jnp.concatenate([x, feats5], axis=1)                        # (b, 2c, d, h, w)

    nf0 = (h + 2) * (w + 2)
    hp = _round_up(h * (w + 2), 128)                 # per-plane out width (incl. junk cols)
    nf = _round_up(max(nf0, 2 * (w + 2) + 2 + hp), 128)   # per-plane in width (flat, zero tail)

    xp = jnp.pad(xcat, ((0, 0), (0, 0), (1, 1), (1, 1), (1, 1)))       # spatial halo
    xp = xp.reshape(b, 2 * c, d + 2, nf0)
    xp = jnp.pad(xp, ((0, 0), (0, 0), (0, 0), (0, nf - nf0)))
    xp = xp.reshape(b, 2 * c, (d + 2) * nf)

    out_flat = pl.pallas_call(
        partial(_bottleneck_kernel, width=w, hp=hp),
        out_shape=jax.ShapeDtypeStruct((b, c, d * hp), jnp.float32),
        grid=(b, d + 2),
        in_specs=[pl.BlockSpec((1, 2 * c, nf), lambda bi, s: (bi, 0, s)),
                  _w_spec(params["wbn"]), _w_spec(params["bbn"])],
        out_specs=pl.BlockSpec((1, c, hp),
                               lambda bi, s: (bi, 0, jnp.maximum(s - 2, 0))),
        scratch_shapes=[pltpu.VMEM((4, 2 * c, nf), jnp.float32)],      # halo-plane ring
        compiler_params=cpb,
    )(xp, params["wbn"], params["bbn"])

    # drop junk columns; result is already NCDHW -> no final transpose needed
    out = out_flat.reshape(b, c, d, hp)[:, :, :, :h * (w + 2)]
    out = out.reshape(b, c, d, h, w + 2)[:, :, :, :, :w]
    return out


# ----------------------------------------------------------------------------
# Deterministic synthetic parameters (PyTorch layouts, BN folded, transposed to
# channels-first (out, in) form, transform_channels zero-padded to ct_pad).
# ----------------------------------------------------------------------------
def init_params(key, c, ct, ct_pad):
    keys = iter(jax.random.split(key, 48))

    def wgt(shape):
        return jax.random.normal(next(keys), shape, jnp.float32) * 0.1

    def bn(nc):
        g = jax.random.uniform(next(keys), (nc,), jnp.float32, 0.5, 1.5)
        bta = jax.random.normal(next(keys), (nc,), jnp.float32) * 0.1
        mu = jax.random.normal(next(keys), (nc,), jnp.float32) * 0.1
        var = jax.random.uniform(next(keys), (nc,), jnp.float32, 0.5, 1.5)
        return g, bta, mu, var

    def fold(w_oi, bnp, eps=1e-5):           # w_oi: (out, in) 1x1 conv weight
        g, bta, mu, var = bnp
        s = g / jnp.sqrt(var + eps)
        return w_oi * s[:, None], (bta - mu * s)[:, None]

    def pad_out(wm, bm):
        pad = ct_pad - wm.shape[0]
        return (jnp.pad(wm, ((0, pad), (0, 0))), jnp.pad(bm, ((0, pad), (0, 0))))

    p = {}
    # query_project: Conv(c->ct)+BN+ReLU, Conv(ct->ct)+BN+ReLU
    wm, bm = fold(wgt((ct, c)), bn(ct))
    p["wq1"], p["bq1"] = pad_out(wm, bm)
    wm, bm = fold(wgt((ct, ct)), bn(ct))
    p["wq2"] = jnp.pad(wm, ((0, ct_pad - ct), (0, ct_pad - ct)))
    p["bq2"] = jnp.pad(bm, ((0, ct_pad - ct), (0, 0)))
    # key_project: Conv(2c->ct)+BN+ReLU, Conv(ct->ct)+BN+ReLU (key input = cat([x_global, x]))
    wm, bm = fold(wgt((ct, 2 * c)), bn(ct))
    wm, bm = pad_out(wm, bm)
    p["wk1g"], p["wk1x"], p["bk1"] = wm[:, :c], wm[:, c:], bm
    wm, bm = fold(wgt((ct, ct)), bn(ct))
    p["wk2"] = jnp.pad(wm, ((0, ct_pad - ct), (0, ct_pad - ct)))
    p["bk2"] = jnp.pad(bm, ((0, ct_pad - ct), (0, 0)))
    # value_project: Conv(2c->ct)+BN+ReLU
    wm, bm = fold(wgt((ct, 2 * c)), bn(ct))
    wm, bm = pad_out(wm, bm)
    p["wvg"], p["wvx"], p["bv"] = wm[:, :c], wm[:, c:], bm
    # out_project: Conv(ct->c)+BN+ReLU
    wm, bm = fold(wgt((c, ct)), bn(c))
    p["wo"] = jnp.pad(wm, ((0, 0), (0, ct_pad - ct)))
    p["bo"] = bm
    # bottleneck Conv3d(2c->c, 3x3x3, no bias) + BN3d, folded; taps grouped per kd:
    # wbn[kd] has shape (c, 9*2c) with column order (kh, kw, ci) matching the
    # in-kernel sublane-stacked window.
    w3 = wgt((c, 2 * c, 3, 3, 3))                       # PyTorch (co, ci, kd, kh, kw)
    g, bta, mu, var = bn(c)
    s = g / jnp.sqrt(var + 1e-5)
    w3f = w3 * s[:, None, None, None, None]
    p["wbn"] = jnp.transpose(w3f, (2, 0, 3, 4, 1)).reshape(3, c, 9 * 2 * c)
    p["bbn"] = (bta - mu * s)[:, None]
    return p


if __name__ == "__main__":
    key = jax.random.PRNGKey(0)
    kx, kp = jax.random.split(key)

    b, c, d, h, w = 2, 4, 4, 8, 8        # feats_channels = 4
    ct = 16                              # transform_channels = 16
    ct_pad = _round_up(max(ct, 8), 8)    # sublane axis only needs a multiple of 8

    x = jax.random.normal(kx, (b, c, d, h, w), jnp.float32)
    params = init_params(kp, c, ct, ct_pad)

    fwd = jax.jit(partial(disparity_level_context, transform_channels=ct))
    out = fwd(x, params)
    jax.block_until_ready(out)

    assert out.shape == (b, c, d, h, w), out.shape
    assert out.dtype == jnp.float32
    assert bool(jnp.isfinite(out).all())
    print("KERNEL_OK")
</pallas_src>

<mosaic_0001>
module attributes {stable_mosaic.version = 11 : i64} {
  func.func @_kv_proj_kernel(%arg0: i32, %arg1: i32, %arg2: memref<1x4x256xf32, #tpu.memory_space<vmem>>, %arg3: memref<1x16x4xf32, #tpu.memory_space<vmem>>, %arg4: memref<1x16x4xf32, #tpu.memory_space<vmem>>, %arg5: memref<16x4xf32, #tpu.memory_space<vmem>>, %arg6: memref<16x1xf32, #tpu.memory_space<vmem>>, %arg7: memref<16x16xf32, #tpu.memory_space<vmem>>, %arg8: memref<16x1xf32, #tpu.memory_space<vmem>>, %arg9: memref<16x4xf32, #tpu.memory_space<vmem>>, %arg10: memref<16x1xf32, #tpu.memory_space<vmem>>, %arg11: memref<1x16x256xf32, #tpu.memory_space<vmem>>, %arg12: memref<1x16x256xf32, #tpu.memory_space<vmem>>) attributes {dimension_semantics = [#tpu.dimension_semantics<parallel>, #tpu.dimension_semantics<parallel>], iteration_bounds = array<i64: 2, 1>, scalar_prefetch = 0 : i64, scratch_operands = 0 : i64, tpu.core_type = #tpu.core_type<tc>, window_params = [{transform_indices = @transform_0, window_bounds = array<i64: 1, 4, 256>}, {transform_indices = @transform_1, window_bounds = array<i64: 1, 16, 4>}, {transform_indices = @transform_2, window_bounds = array<i64: 1, 16, 4>}, {pipeline_mode = #tpu.pipeline_mode<synchronous>, transform_indices = @transform_3, window_bounds = array<i64: 16, 4>}, {pipeline_mode = #tpu.pipeline_mode<synchronous>, transform_indices = @transform_4, window_bounds = array<i64: 16, 1>}, {pipeline_mode = #tpu.pipeline_mode<synchronous>, transform_indices = @transform_5, window_bounds = array<i64: 16, 16>}, {pipeline_mode = #tpu.pipeline_mode<synchronous>, transform_indices = @transform_6, window_bounds = array<i64: 16, 1>}, {pipeline_mode = #tpu.pipeline_mode<synchronous>, transform_indices = @transform_7, window_bounds = array<i64: 16, 4>}, {pipeline_mode = #tpu.pipeline_mode<synchronous>, transform_indices = @transform_8, window_bounds = array<i64: 16, 1>}, {transform_indices = @transform_9, window_bounds = array<i64: 1, 16, 256>}, {transform_indices = @transform_10, window_bounds = array<i64: 1, 16, 256>}]} {
    %c0 = arith.constant 0 : index
    %c0_0 = arith.constant 0 : index
    %c0_1 = arith.constant 0 : index
    %0 = vector.load %arg2[%c0, %c0_0, %c0_1] : memref<1x4x256xf32, #tpu.memory_space<vmem>>, vector<1x4x256xf32>
    %1 = vector.shape_cast %0 : vector<1x4x256xf32> to vector<4x256xf32>
    %2 = tpu.iota {dimensions = array<i32: 1>} : vector<4x256xi32>
    %3 = tpu.iota {dimensions = array<i32: 0>} : vector<4x256xi32>
    %c256_i32 = arith.constant 256 : i32
    %4 = arith.muli %arg1, %c256_i32 : i32
    %5 = vector.broadcast %4 : i32 to vector<4x256xi32>
    %6 = arith.addi %5, %2 : vector<4x256xi32>
    %c64_i32 = arith.constant 64 : i32
    %7 = vector.broadcast %c64_i32 : i32 to vector<4x256xi32>
    %8 = arith.muli %3, %7 : vector<4x256xi32>
    %9 = arith.cmpi sge, %6, %8 : vector<4x256xi32>
    %c64_i32_2 = arith.constant 64 : i32
    %10 = vector.broadcast %c64_i32_2 : i32 to vector<4x256xi32>
    %11 = arith.addi %8, %10 : vector<4x256xi32>
    %12 = arith.cmpi slt, %6, %11 : vector<4x256xi32>
    %13 = arith.andi %9, %12 : vector<4x256xi1>
    %14 = arith.extui %13 : vector<4x256xi1> to vector<4x256xi32>
    %15 = arith.sitofp %14 : vector<4x256xi32> to vector<4x256xf32>
    %c0_3 = arith.constant 0 : index
    %c0_4 = arith.constant 0 : index
    %c0_5 = arith.constant 0 : index
    %16 = vector.load %arg3[%c0_3, %c0_4, %c0_5] : memref<1x16x4xf32, #tpu.memory_space<vmem>>, vector<1x16x4xf32>
    %17 = vector.shape_cast %16 : vector<1x16x4xf32> to vector<16x4xf32>
    %cst = arith.constant dense<0.000000e+00> : vector<16x256xf32>
    %18 = tpu.matmul %17, %15, %cst {dimension_numbers = #tpu.dot_dimension_numbers<[1], [0], [0], [1], [0, 0, 1, 1], [], []>} : vector<16x4xf32>, vector<4x256xf32>, vector<16x256xf32> -> vector<16x256xf32>
    %c0_6 = arith.constant 0 : index
    %c0_7 = arith.constant 0 : index
    %c0_8 = arith.constant 0 : index
    %19 = vector.load %arg4[%c0_6, %c0_7, %c0_8] : memref<1x16x4xf32, #tpu.memory_space<vmem>>, vector<1x16x4xf32>
    %20 = vector.shape_cast %19 : vector<1x16x4xf32> to vector<16x4xf32>
    %cst_9 = arith.constant dense<0.000000e+00> : vector<16x256xf32>
    %21 = tpu.matmul %20, %15, %cst_9 {dimension_numbers = #tpu.dot_dimension_numbers<[1], [0], [0], [1], [0, 0, 1, 1], [], []>} : vector<16x4xf32>, vector<4x256xf32>, vector<16x256xf32> -> vector<16x256xf32>
    %c0_10 = arith.constant 0 : index
    %c0_11 = arith.constant 0 : index
    %22 = vector.load %arg5[%c0_10, %c0_11] : memref<16x4xf32, #tpu.memory_space<vmem>>, vector<16x4xf32>
    %cst_12 = arith.constant dense<0.000000e+00> : vector<16x256xf32>
    %23 = tpu.matmul %22, %1, %cst_12 {dimension_numbers = #tpu.dot_dimension_numbers<[1], [0], [0], [1], [0, 0, 1, 1], [], []>} : vector<16x4xf32>, vector<4x256xf32>, vector<16x256xf32> -> vector<16x256xf32>
    %24 = arith.addf %23, %18 : vector<16x256xf32>
    %c0_13 = arith.constant 0 : index
    %c0_14 = arith.constant 0 : index
    %25 = vector.load %arg6[%c0_13, %c0_14] : memref<16x1xf32, #tpu.memory_space<vmem>>, vector<16x1xf32>
    %26 = vector.broadcast %25 : vector<16x1xf32> to vector<16x256xf32>
    %27 = arith.addf %24, %26 : vector<16x256xf32>
    %cst_15 = arith.constant 0.000000e+00 : f32
    %28 = vector.broadcast %cst_15 : f32 to vector<16x256xf32>
    %29 = arith.maximumf %27, %28 : vector<16x256xf32>
    %c0_16 = arith.constant 0 : index
    %c0_17 = arith.constant 0 : index
    %30 = vector.load %arg7[%c0_16, %c0_17] : memref<16x16xf32, #tpu.memory_space<vmem>>, vector<16x16xf32>
    %cst_18 = arith.constant dense<0.000000e+00> : vector<16x256xf32>
    %31 = tpu.matmul %30, %29, %cst_18 {dimension_numbers = #tpu.dot_dimension_numbers<[1], [0], [0], [1], [0, 0, 1, 1], [], []>} : vector<16x16xf32>, vector<16x256xf32>, vector<16x256xf32> -> vector<16x256xf32>
    %c0_19 = arith.constant 0 : index
    %c0_20 = arith.constant 0 : index
    %32 = vector.load %arg8[%c0_19, %c0_20] : memref<16x1xf32, #tpu.memory_space<vmem>>, vector<16x1xf32>
    %33 = vector.broadcast %32 : vector<16x1xf32> to vector<16x256xf32>
    %34 = arith.addf %31, %33 : vector<16x256xf32>
    %cst_21 = arith.constant 0.000000e+00 : f32
    %35 = vector.broadcast %cst_21 : f32 to vector<16x256xf32>
    %36 = arith.maximumf %34, %35 : vector<16x256xf32>
    %c0_22 = arith.constant 0 : index
    %c0_23 = arith.constant 0 : index
    %c0_24 = arith.constant 0 : index
    %37 = vector.load %arg11[%c0_22, %c0_23, %c0_24] : memref<1x16x256xf32, #tpu.memory_space<vmem>>, vector<1x16x256xf32>
    %38 = vector.shape_cast %37 : vector<1x16x256xf32> to vector<16x256xf32>
    %39 = vector.shape_cast %36 : vector<16x256xf32> to vector<1x16x256xf32>
    tpu.vector_store %arg11[%c0_22, %c0_23, %c0_24], %39 {strides = array<i32>} : memref<1x16x256xf32, #tpu.memory_space<vmem>>, vector<1x16x256xf32>,
    %c0_25 = arith.constant 0 : index
    %c0_26 = arith.constant 0 : index
    %40 = vector.load %arg9[%c0_25, %c0_26] : memref<16x4xf32, #tpu.memory_space<vmem>>, vector<16x4xf32>
    %cst_27 = arith.constant dense<0.000000e+00> : vector<16x256xf32>
    %41 = tpu.matmul %40, %1, %cst_27 {dimension_numbers = #tpu.dot_dimension_numbers<[1], [0], [0], [1], [0, 0, 1, 1], [], []>} : vector<16x4xf32>, vector<4x256xf32>, vector<16x256xf32> -> vector<16x256xf32>
    %42 = arith.addf %41, %21 : vector<16x256xf32>
    %c0_28 = arith.constant 0 : index
    %c0_29 = arith.constant 0 : index
    %43 = vector.load %arg10[%c0_28, %c0_29] : memref<16x1xf32, #tpu.memory_space<vmem>>, vector<16x1xf32>
    %44 = vector.broadcast %43 : vector<16x1xf32> to vector<16x256xf32>
    %45 = arith.addf %42, %44 : vector<16x256xf32>
    %cst_30 = arith.constant 0.000000e+00 : f32
    %46 = vector.broadcast %cst_30 : f32 to vector<16x256xf32>
    %47 = arith.maximumf %45, %46 : vector<16x256xf32>
    %c0_31 = arith.constant 0 : index
    %c0_32 = arith.constant 0 : index
    %c0_33 = arith.constant 0 : index
    %48 = vector.load %arg12[%c0_31, %c0_32, %c0_33] : memref<1x16x256xf32, #tpu.memory_space<vmem>>, vector<1x16x256xf32>
    %49 = vector.shape_cast %48 : vector<1x16x256xf32> to vector<16x256xf32>
    %50 = vector.shape_cast %47 : vector<16x256xf32> to vector<1x16x256xf32>
    tpu.vector_store %arg12[%c0_31, %c0_32, %c0_33], %50 {strides = array<i32>} : memref<1x16x256xf32, #tpu.memory_space<vmem>>, vector<1x16x256xf32>,
    return
  }
  func.func @transform_0(%arg0: i32, %arg1: i32) -> (i32, i32, i32) {
    %c0_i32 = arith.constant 0 : i32
    %c0_i32_0 = arith.constant 0 : i32
    return %arg0, %c0_i32, %arg1 : i32, i32, i32
  }
  func.func @transform_1(%arg0: i32, %arg1: i32) -> (i32, i32, i32) {
    %c0_i32 = arith.constant 0 : i32
    %c0_i32_0 = arith.constant 0 : i32
    %c0_i32_1 = arith.constant 0 : i32
    return %arg0, %c0_i32, %c0_i32_0 : i32, i32, i32
  }
  func.func @transform_2(%arg0: i32, %arg1: i32) -> (i32, i32, i32) {
    %c0_i32 = arith.constant 0 : i32
    %c0_i32_0 = arith.constant 0 : i32
    %c0_i32_1 = arith.constant 0 : i32
    return %arg0, %c0_i32, %c0_i32_0 : i32, i32, i32
  }
  func.func @transform_3(%arg0: i32, %arg1: i32) -> (i32, i32) {
    %c0_i32 = arith.constant 0 : i32
    %c0_i32_0 = arith.constant 0 : i32
    %c0_i32_1 = arith.constant 0 : i32
    return %c0_i32, %c0_i32_0 : i32, i32
  }
  func.func @transform_4(%arg0: i32, %arg1: i32) -> (i32, i32) {
    %c0_i32 = arith.constant 0 : i32
    %c0_i32_0 = arith.constant 0 : i32
    %c0_i32_1 = arith.constant 0 : i32
    return %c0_i32, %c0_i32_0 : i32, i32
  }
  func.func @transform_5(%arg0: i32, %arg1: i32) -> (i32, i32) {
    %c0_i32 = arith.constant 0 : i32
    %c0_i32_0 = arith.constant 0 : i32
    %c0_i32_1 = arith.constant 0 : i32
    return %c0_i32, %c0_i32_0 : i32, i32
  }
  func.func @transform_6(%arg0: i32, %arg1: i32) -> (i32, i32) {
    %c0_i32 = arith.constant 0 : i32
    %c0_i32_0 = arith.constant 0 : i32
    %c0_i32_1 = arith.constant 0 : i32
    return %c0_i32, %c0_i32_0 : i32, i32
  }
  func.func @transform_7(%arg0: i32, %arg1: i32) -> (i32, i32) {
    %c0_i32 = arith.constant 0 : i32
    %c0_i32_0 = arith.constant 0 : i32
    %c0_i32_1 = arith.constant 0 : i32
    return %c0_i32, %c0_i32_0 : i32, i32
  }
  func.func @transform_8(%arg0: i32, %arg1: i32) -> (i32, i32) {
    %c0_i32 = arith.constant 0 : i32
    %c0_i32_0 = arith.constant 0 : i32
    %c0_i32_1 = arith.constant 0 : i32
    return %c0_i32, %c0_i32_0 : i32, i32
  }
  func.func @transform_9(%arg0: i32, %arg1: i32) -> (i32, i32, i32) {
    %c0_i32 = arith.constant 0 : i32
    %c0_i32_0 = arith.constant 0 : i32
    return %arg0, %c0_i32, %arg1 : i32, i32, i32
  }
  func.func @transform_10(%arg0: i32, %arg1: i32) -> (i32, i32, i32) {
    %c0_i32 = arith.constant 0 : i32
    %c0_i32_0 = arith.constant 0 : i32
    return %arg0, %c0_i32, %arg1 : i32, i32, i32
  }
}

module attributes {stable_mosaic.version = 11 : i64} {
  func.func @_flash_attn_kernel(%arg0: i32, %arg1: i32, %arg2: i32, %arg3: memref<1x4x256xf32, #tpu.memory_space<vmem>>, %arg4: memref<1x16x256xf32, #tpu.memory_space<vmem>>, %arg5: memref<1x16x256xf32, #tpu.memory_space<vmem>>, %arg6: memref<16x4xf32, #tpu.memory_space<vmem>>, %arg7: memref<16x1xf32, #tpu.memory_space<vmem>>, %arg8: memref<16x16xf32, #tpu.memory_space<vmem>>, %arg9: memref<16x1xf32, #tpu.memory_space<vmem>>, %arg10: memref<4x16xf32, #tpu.memory_space<vmem>>, %arg11: memref<4x1xf32, #tpu.memory_space<vmem>>, %arg12: memref<1x4x256xf32, #tpu.memory_space<vmem>>, %arg13: memref<16x256xf32, #tpu.memory_space<vmem>>, %arg14: memref<1x256xf32, #tpu.memory_space<vmem>>, %arg15: memref<1x256xf32, #tpu.memory_space<vmem>>, %arg16: memref<16x256xf32, #tpu.memory_space<vmem>>) attributes {dimension_semantics = [#tpu.dimension_semantics<parallel>, #tpu.dimension_semantics<parallel>, #tpu.dimension_semantics<arbitrary>], iteration_bounds = array<i64: 2, 1, 1>, scalar_prefetch = 0 : i64, scratch_operands = 4 : i64, tpu.core_type = #tpu.core_type<tc>, window_params = [{transform_indices = @transform_0, window_bounds = array<i64: 1, 4, 256>}, {transform_indices = @transform_1, window_bounds = array<i64: 1, 16, 256>}, {transform_indices = @transform_2, window_bounds = array<i64: 1, 16, 256>}, {pipeline_mode = #tpu.pipeline_mode<synchronous>, transform_indices = @transform_3, window_bounds = array<i64: 16, 4>}, {pipeline_mode = #tpu.pipeline_mode<synchronous>, transform_indices = @transform_4, window_bounds = array<i64: 16, 1>}, {pipeline_mode = #tpu.pipeline_mode<synchronous>, transform_indices = @transform_5, window_bounds = array<i64: 16, 16>}, {pipeline_mode = #tpu.pipeline_mode<synchronous>, transform_indices = @transform_6, window_bounds = array<i64: 16, 1>}, {pipeline_mode = #tpu.pipeline_mode<synchronous>, transform_indices = @transform_7, window_bounds = array<i64: 4, 16>}, {pipeline_mode = #tpu.pipeline_mode<synchronous>, transform_indices = @transform_8, window_bounds = array<i64: 4, 1>}, {transform_indices = @transform_9, window_bounds = array<i64: 1, 4, 256>}]} {
    %c0_i32 = arith.constant 0 : i32
    %0 = arith.cmpi eq, %arg2, %c0_i32 : i32
    %1 = arith.extui %0 : i1 to i32
    %c0_i32_0 = arith.constant 0 : i32
    %2 = arith.cmpi ne, %1, %c0_i32_0 : i32
    scf.if %2 {
      %c0_25 = arith.constant 0 : index
      %c0_26 = arith.constant 0 : index
      %c0_27 = arith.constant 0 : index
      %34 = vector.load %arg3[%c0_25, %c0_26, %c0_27] : memref<1x4x256xf32, #tpu.memory_space<vmem>>, vector<1x4x256xf32>
      %35 = vector.shape_cast %34 : vector<1x4x256xf32> to vector<4x256xf32>
      %c0_28 = arith.constant 0 : index
      %c0_29 = arith.constant 0 : index
      %36 = vector.load %arg6[%c0_28, %c0_29] : memref<16x4xf32, #tpu.memory_space<vmem>>, vector<16x4xf32>
      %cst_30 = arith.constant dense<0.000000e+00> : vector<16x256xf32>
      %37 = tpu.matmul %36, %35, %cst_30 {dimension_numbers = #tpu.dot_dimension_numbers<[1], [0], [0], [1], [0, 0, 1, 1], [], []>} : vector<16x4xf32>, vector<4x256xf32>, vector<16x256xf32> -> vector<16x256xf32>
      %c0_31 = arith.constant 0 : index
      %c0_32 = arith.constant 0 : index
      %38 = vector.load %arg7[%c0_31, %c0_32] : memref<16x1xf32, #tpu.memory_space<vmem>>, vector<16x1xf32>
      %39 = vector.broadcast %38 : vector<16x1xf32> to vector<16x256xf32>
      %40 = arith.addf %37, %39 : vector<16x256xf32>
      %cst_33 = arith.constant 0.000000e+00 : f32
      %41 = vector.broadcast %cst_33 : f32 to vector<16x256xf32>
      %42 = arith.maximumf %40, %41 : vector<16x256xf32>
      %c0_34 = arith.constant 0 : index
      %c0_35 = arith.constant 0 : index
      %43 = vector.load %arg8[%c0_34, %c0_35] : memref<16x16xf32, #tpu.memory_space<vmem>>, vector<16x16xf32>
      %cst_36 = arith.constant dense<0.000000e+00> : vector<16x256xf32>
      %44 = tpu.matmul %43, %42, %cst_36 {dimension_numbers = #tpu.dot_dimension_numbers<[1], [0], [0], [1], [0, 0, 1, 1], [], []>} : vector<16x16xf32>, vector<16x256xf32>, vector<16x256xf32> -> vector<16x256xf32>
      %c0_37 = arith.constant 0 : index
      %c0_38 = arith.constant 0 : index
      %45 = vector.load %arg9[%c0_37, %c0_38] : memref<16x1xf32, #tpu.memory_space<vmem>>, vector<16x1xf32>
      %46 = vector.broadcast %45 : vector<16x1xf32> to vector<16x256xf32>
      %47 = arith.addf %44, %46 : vector<16x256xf32>
      %cst_39 = arith.constant 0.000000e+00 : f32
      %48 = vector.broadcast %cst_39 : f32 to vector<16x256xf32>
      %49 = arith.maximumf %47, %48 : vector<16x256xf32>
      %c0_40 = arith.constant 0 : index
      %c0_41 = arith.constant 0 : index
      %50 = vector.load %arg13[%c0_40, %c0_41] : memref<16x256xf32, #tpu.memory_space<vmem>>, vector<16x256xf32>
      tpu.vector_store %arg13[%c0_40, %c0_41], %49 {strides = array<i32>} : memref<16x256xf32, #tpu.memory_space<vmem>>, vector<16x256xf32>,
      %cst_42 = arith.constant 0xFF800000 : f32
      %51 = vector.broadcast %cst_42 : f32 to vector<1x256xf32>
      %c0_43 = arith.constant 0 : index
      %c0_44 = arith.constant 0 : index
      %52 = vector.load %arg14[%c0_43, %c0_44] : memref<1x256xf32, #tpu.memory_space<vmem>>, vector<1x256xf32>
      tpu.vector_store %arg14[%c0_43, %c0_44], %51 {strides = array<i32>} : memref<1x256xf32, #tpu.memory_space<vmem>>, vector<1x256xf32>,
      %cst_45 = arith.constant 0.000000e+00 : f32
      %53 = vector.broadcast %cst_45 : f32 to vector<1x256xf32>
      %c0_46 = arith.constant 0 : index
      %c0_47 = arith.constant 0 : index
      %54 = vector.load %arg15[%c0_46, %c0_47] : memref<1x256xf32, #tpu.memory_space<vmem>>, vector<1x256xf32>
      tpu.vector_store %arg15[%c0_46, %c0_47], %53 {strides = array<i32>} : memref<1x256xf32, #tpu.memory_space<vmem>>, vector<1x256xf32>,
      %cst_48 = arith.constant 0.000000e+00 : f32
      %55 = vector.broadcast %cst_48 : f32 to vector<16x256xf32>
      %c0_49 = arith.constant 0 : index
      %c0_50 = arith.constant 0 : index
      %56 = vector.load %arg16[%c0_49, %c0_50] : memref<16x256xf32, #tpu.memory_space<vmem>>, vector<16x256xf32>
      tpu.vector_store %arg16[%c0_49, %c0_50], %55 {strides = array<i32>} : memref<16x256xf32, #tpu.memory_space<vmem>>, vector<16x256xf32>,
    } else {
    }
    %c0 = arith.constant 0 : index
    %c0_1 = arith.constant 0 : index
    %3 = vector.load %arg13[%c0, %c0_1] : memref<16x256xf32, #tpu.memory_space<vmem>>, vector<16x256xf32>
    %c0_2 = arith.constant 0 : index
    %c0_3 = arith.constant 0 : index
    %c0_4 = arith.constant 0 : index
    %4 = vector.load %arg4[%c0_2, %c0_3, %c0_4] : memref<1x16x256xf32, #tpu.memory_space<vmem>>, vector<1x16x256xf32>
    %5 = vector.shape_cast %4 : vector<1x16x256xf32> to vector<16x256xf32>
    %c0_5 = arith.constant 0 : index
    %c0_6 = arith.constant 0 : index
    %c0_7 = arith.constant 0 : index
    %6 = vector.load %arg5[%c0_5, %c0_6, %c0_7] : memref<1x16x256xf32, #tpu.memory_space<vmem>>, vector<1x16x256xf32>
    %7 = vector.shape_cast %6 : vector<1x16x256xf32> to vector<16x256xf32>
    %cst = arith.constant dense<0.000000e+00> : vector<256x256xf32>
    %8 = tpu.matmul %5, %3, %cst {dimension_numbers = #tpu.dot_dimension_numbers<[0], [0], [1], [1], [0, 1, 1, 1], [], []>} : vector<16x256xf32>, vector<16x256xf32>, vector<256x256xf32> -> vector<256x256xf32>
    %c0_8 = arith.constant 0 : index
    %c0_9 = arith.constant 0 : index
    %9 = vector.load %arg14[%c0_8, %c0_9] : memref<1x256xf32, #tpu.memory_space<vmem>>, vector<1x256xf32>
    %cst_10 = arith.constant dense<0xFF800000> : vector<256xf32>
    %10 = vector.multi_reduction <maximumf>, %8, %cst_10 [0] : vector<256x256xf32> to vector<256xf32>
    %11 = vector.shape_cast %10 : vector<256xf32> to vector<1x256xf32>
    %12 = arith.maximumf %9, %11 : vector<1x256xf32>
    %13 = arith.subf %9, %12 : vector<1x256xf32>
    %14 = math.exp %13 : vector<1x256xf32>
    %15 = vector.broadcast %12 : vector<1x256xf32> to vector<256x256xf32>
    %16 = arith.subf %8, %15 : vector<256x256xf32>
    %17 = math.exp %16 : vector<256x256xf32>
    %c0_11 = arith.constant 0 : index
    %c0_12 = arith.constant 0 : index
    %18 = vector.load %arg15[%c0_11, %c0_12] : memref<1x256xf32, #tpu.memory_space<vmem>>, vector<1x256xf32>
    %19 = arith.mulf %14, %18 : vector<1x256xf32>
    %cst_13 = arith.constant dense<0.000000e+00> : vector<256xf32>
    %20 = vector.multi_reduction <add>, %17, %cst_13 [0] : vector<256x256xf32> to vector<256xf32>
    %21 = vector.shape_cast %20 : vector<256xf32> to vector<1x256xf32>
    %22 = arith.addf %19, %21 : vector<1x256xf32>
    %c0_14 = arith.constant 0 : index
    %c0_15 = arith.constant 0 : index
    %23 = vector.load %arg15[%c0_14, %c0_15] : memref<1x256xf32, #tpu.memory_space<vmem>>, vector<1x256xf32>
    tpu.vector_store %arg15[%c0_14, %c0_15], %22 {strides = array<i32>} : memref<1x256xf32, #tpu.memory_space<vmem>>, vector<1x256xf32>,
    %c0_16 = arith.constant 0 : index
    %c0_17 = arith.constant 0 : index
    %24 = vector.load %arg16[%c0_16, %c0_17] : memref<16x256xf32, #tpu.memory_space<vmem>>, vector<16x256xf32>
    %25 = vector.broadcast %14 : vector<1x256xf32> to vector<16x256xf32>
    %26 = arith.mulf %25, %24 : vector<16x256xf32>
    %cst_18 = arith.constant dense<0.000000e+00> : vector<16x256xf32>
    %27 = tpu.matmul %7, %17, %cst_18 {dimension_numbers = #tpu.dot_dimension_numbers<[1], [0], [0], [1], [0, 0, 1, 1], [], []>} : vector<16x256xf32>, vector<256x256xf32>, vector<16x256xf32> -> vector<16x256xf32>
    %28 = arith.addf %26, %27 : vector<16x256xf32>
    %c0_19 = arith.constant 0 : index
    %c0_20 = arith.constant 0 : index
    %29 = vector.load %arg16[%c0_19, %c0_20] : memref<16x256xf32, #tpu.memory_space<vmem>>, vector<16x256xf32>
    tpu.vector_store %arg16[%c0_19, %c0_20], %28 {strides = array<i32>} : memref<16x256xf32, #tpu.memory_space<vmem>>, vector<16x256xf32>,
    %c0_21 = arith.constant 0 : index
    %c0_22 = arith.constant 0 : index
    %30 = vector.load %arg14[%c0_21, %c0_22] : memref<1x256xf32, #tpu.memory_space<vmem>>, vector<1x256xf32>
    tpu.vector_store %arg14[%c0_21, %c0_22], %12 {strides = array<i32>} : memref<1x256xf32, #tpu.memory_space<vmem>>, vector<1x256xf32>,
    %c0_i32_23 = arith.constant 0 : i32
    %31 = arith.cmpi eq, %arg2, %c0_i32_23 : i32
    %32 = arith.extui %31 : i1 to i32
    %c0_i32_24 = arith.constant 0 : i32
    %33 = arith.cmpi ne, %32, %c0_i32_24 : i32
    scf.if %33 {
      %c0_25 = arith.constant 0 : index
      %c0_26 = arith.constant 0 : index
      %34 = vector.load %arg16[%c0_25, %c0_26] : memref<16x256xf32, #tpu.memory_space<vmem>>, vector<16x256xf32>
      %c0_27 = arith.constant 0 : index
      %c0_28 = arith.constant 0 : index
      %35 = vector.load %arg15[%c0_27, %c0_28] : memref<1x256xf32, #tpu.memory_space<vmem>>, vector<1x256xf32>
      %36 = tpu.reciprocal %35 {approx = true} : vector<1x256xf32> -> vector<1x256xf32>
      %37 = vector.broadcast %36 : vector<1x256xf32> to vector<16x256xf32>
      %38 = arith.mulf %34, %37 : vector<16x256xf32>
      %c0_29 = arith.constant 0 : index
      %c0_30 = arith.constant 0 : index
      %39 = vector.load %arg10[%c0_29, %c0_30] : memref<4x16xf32, #tpu.memory_space<vmem>>, vector<4x16xf32>
      %cst_31 = arith.constant dense<0.000000e+00> : vector<4x256xf32>
      %40 = tpu.matmul %39, %38, %cst_31 {dimension_numbers = #tpu.dot_dimension_numbers<[1], [0], [0], [1], [0, 0, 1, 1], [], []>} : vector<4x16xf32>, vector<16x256xf32>, vector<4x256xf32> -> vector<4x256xf32>
      %c0_32 = arith.constant 0 : index
      %c0_33 = arith.constant 0 : index
      %41 = vector.load %arg11[%c0_32, %c0_33] : memref<4x1xf32, #tpu.memory_space<vmem>>, vector<4x1xf32>
      %42 = vector.broadcast %41 : vector<4x1xf32> to vector<4x256xf32>
      %43 = arith.addf %40, %42 : vector<4x256xf32>
      %cst_34 = arith.constant 0.000000e+00 : f32
      %44 = vector.broadcast %cst_34 : f32 to vector<4x256xf32>
      %45 = arith.maximumf %43, %44 : vector<4x256xf32>
      %c0_35 = arith.constant 0 : index
      %c0_36 = arith.constant 0 : index
      %c0_37 = arith.constant 0 : index
      %46 = vector.load %arg12[%c0_35, %c0_36, %c0_37] : memref<1x4x256xf32, #tpu.memory_space<vmem>>, vector<1x4x256xf32>
      %47 = vector.shape_cast %46 : vector<1x4x256xf32> to vector<4x256xf32>
      %48 = vector.shape_cast %45 : vector<4x256xf32> to vector<1x4x256xf32>
      tpu.vector_store %arg12[%c0_35, %c0_36, %c0_37], %48 {strides = array<i32>} : memref<1x4x256xf32, #tpu.memory_space<vmem>>, vector<1x4x256xf32>,
    } else {
    }
    return
  }
  func.func @transform_0(%arg0: i32, %arg1: i32, %arg2: i32) -> (i32, i32, i32) {
    %c0_i32 = arith.constant 0 : i32
    %c0_i32_0 = arith.constant 0 : i32
    return %arg0, %c0_i32, %arg1 : i32, i32, i32
  }
  func.func @transform_1(%arg0: i32, %arg1: i32, %arg2: i32) -> (i32, i32, i32) {
    %c0_i32 = arith.constant 0 : i32
    %c0_i32_0 = arith.constant 0 : i32
    return %arg0, %c0_i32, %arg2 : i32, i32, i32
  }
  func.func @transform_2(%arg0: i32, %arg1: i32, %arg2: i32) -> (i32, i32, i32) {
    %c0_i32 = arith.constant 0 : i32
    %c0_i32_0 = arith.constant 0 : i32
    return %arg0, %c0_i32, %arg2 : i32, i32, i32
  }
  func.func @transform_3(%arg0: i32, %arg1: i32, %arg2: i32) -> (i32, i32) {
    %c0_i32 = arith.constant 0 : i32
    %c0_i32_0 = arith.constant 0 : i32
    %c0_i32_1 = arith.constant 0 : i32
    return %c0_i32, %c0_i32_0 : i32, i32
  }
  func.func @transform_4(%arg0: i32, %arg1: i32, %arg2: i32) -> (i32, i32) {
    %c0_i32 = arith.constant 0 : i32
    %c0_i32_0 = arith.constant 0 : i32
    %c0_i32_1 = arith.constant 0 : i32
    return %c0_i32, %c0_i32_0 : i32, i32
  }
  func.func @transform_5(%arg0: i32, %arg1: i32, %arg2: i32) -> (i32, i32) {
    %c0_i32 = arith.constant 0 : i32
    %c0_i32_0 = arith.constant 0 : i32
    %c0_i32_1 = arith.constant 0 : i32
    return %c0_i32, %c0_i32_0 : i32, i32
  }
  func.func @transform_6(%arg0: i32, %arg1: i32, %arg2: i32) -> (i32, i32) {
    %c0_i32 = arith.constant 0 : i32
    %c0_i32_0 = arith.constant 0 : i32
    %c0_i32_1 = arith.constant 0 : i32
    return %c0_i32, %c0_i32_0 : i32, i32
  }
  func.func @transform_7(%arg0: i32, %arg1: i32, %arg2: i32) -> (i32, i32) {
    %c0_i32 = arith.constant 0 : i32
    %c0_i32_0 = arith.constant 0 : i32
    %c0_i32_1 = arith.constant 0 : i32
    return %c0_i32, %c0_i32_0 : i32, i32
  }
  func.func @transform_8(%arg0: i32, %arg1: i32, %arg2: i32) -> (i32, i32) {
    %c0_i32 = arith.constant 0 : i32
    %c0_i32_0 = arith.constant 0 : i32
    %c0_i32_1 = arith.constant 0 : i32
    return %c0_i32, %c0_i32_0 : i32, i32
  }
  func.func @transform_9(%arg0: i32, %arg1: i32, %arg2: i32) -> (i32, i32, i32) {
    %c0_i32 = arith.constant 0 : i32
    %c0_i32_0 = arith.constant 0 : i32
    return %arg0, %c0_i32, %arg1 : i32, i32, i32
  }
}

module attributes {stable_mosaic.version = 11 : i64} {
  func.func @_bottleneck_kernel(%arg0: i32, %arg1: i32, %arg2: memref<1x8x256xf32, #tpu.memory_space<vmem>>, %arg3: memref<3x4x72xf32, #tpu.memory_space<vmem>>, %arg4: memref<4x1xf32, #tpu.memory_space<vmem>>, %arg5: memref<1x4x128xf32, #tpu.memory_space<vmem>>, %arg6: memref<4x8x256xf32, #tpu.memory_space<vmem>>) attributes {dimension_semantics = [#tpu.dimension_semantics<parallel>, #tpu.dimension_semantics<arbitrary>], iteration_bounds = array<i64: 2, 6>, scalar_prefetch = 0 : i64, scratch_operands = 1 : i64, tpu.core_type = #tpu.core_type<tc>, window_params = [{transform_indices = @transform_0, window_bounds = array<i64: 1, 8, 256>}, {pipeline_mode = #tpu.pipeline_mode<synchronous>, transform_indices = @transform_1, window_bounds = array<i64: 3, 4, 72>}, {pipeline_mode = #tpu.pipeline_mode<synchronous>, transform_indices = @transform_2, window_bounds = array<i64: 4, 1>}, {transform_indices = @transform_3, window_bounds = array<i64: 1, 4, 128>}]} {
    %c0 = arith.constant 0 : index
    %c0_0 = arith.constant 0 : index
    %c0_1 = arith.constant 0 : index
    %0 = vector.load %arg2[%c0, %c0_0, %c0_1] : memref<1x8x256xf32, #tpu.memory_space<vmem>>, vector<1x8x256xf32>
    %1 = vector.shape_cast %0 : vector<1x8x256xf32> to vector<8x256xf32>
    %c3_i32 = arith.constant 3 : i32
    %2 = arith.andi %arg1, %c3_i32 : i32
    %3 = arith.index_cast %2 : i32 to index
    %c0_2 = arith.constant 0 : index
    %c0_3 = arith.constant 0 : index
    %4 = vector.load %arg6[%3, %c0_2, %c0_3] : memref<4x8x256xf32, #tpu.memory_space<vmem>>, vector<1x8x256xf32>
    %5 = vector.shape_cast %4 : vector<1x8x256xf32> to vector<8x256xf32>
    %6 = vector.shape_cast %1 : vector<8x256xf32> to vector<1x8x256xf32>
    tpu.vector_store %arg6[%3, %c0_2, %c0_3], %6 {strides = array<i32>} : memref<4x8x256xf32, #tpu.memory_space<vmem>>, vector<1x8x256xf32>,
    %c2_i32 = arith.constant 2 : i32
    %7 = arith.cmpi sge, %arg1, %c2_i32 : i32
    %8 = arith.extui %7 : i1 to i32
    %c0_i32 = arith.constant 0 : i32
    %9 = arith.cmpi ne, %8, %c0_i32 : i32
    scf.if %9 {
      %cst = arith.constant 0.000000e+00 : f32
      %10 = vector.broadcast %cst : f32 to vector<4x128xf32>
      %c2_i32_4 = arith.constant 2 : i32
      %11 = arith.addi %arg1, %c2_i32_4 : i32
      %c0_i32_5 = arith.constant 0 : i32
      %12 = arith.addi %11, %c0_i32_5 : i32
      %c3_i32_6 = arith.constant 3 : i32
      %13 = arith.andi %12, %c3_i32_6 : i32
      %14 = arith.index_cast %13 : i32 to index
      %c0_7 = arith.constant 0 : index
      %c0_8 = arith.constant 0 : index
      %15 = vector.load %arg6[%14, %c0_7, %c0_8] : memref<4x8x256xf32, #tpu.memory_space<vmem>>, vector<1x8x256xf32>
      %16 = vector.shape_cast %15 : vector<1x8x256xf32> to vector<8x256xf32>
      %17 = vector.extract_strided_slice %16 {offsets = [0, 0], sizes = [8, 128], strides = [1, 1]} : vector<8x256xf32> to vector<8x128xf32>
      %18 = vector.extract_strided_slice %16 {offsets = [0, 1], sizes = [8, 128], strides = [1, 1]} : vector<8x256xf32> to vector<8x128xf32>
      %19 = vector.extract_strided_slice %16 {offsets = [0, 2], sizes = [8, 128], strides = [1, 1]} : vector<8x256xf32> to vector<8x128xf32>
      %20 = vector.extract_strided_slice %16 {offsets = [0, 10], sizes = [8, 128], strides = [1, 1]} : vector<8x256xf32> to vector<8x128xf32>
      %21 = vector.extract_strided_slice %16 {offsets = [0, 11], sizes = [8, 128], strides = [1, 1]} : vector<8x256xf32> to vector<8x128xf32>
      %22 = vector.extract_strided_slice %16 {offsets = [0, 12], sizes = [8, 128], strides = [1, 1]} : vector<8x256xf32> to vector<8x128xf32>
      %23 = vector.extract_strided_slice %16 {offsets = [0, 20], sizes = [8, 128], strides = [1, 1]} : vector<8x256xf32> to vector<8x128xf32>
      %24 = vector.extract_strided_slice %16 {offsets = [0, 21], sizes = [8, 128], strides = [1, 1]} : vector<8x256xf32> to vector<8x128xf32>
      %25 = vector.extract_strided_slice %16 {offsets = [0, 22], sizes = [8, 128], strides = [1, 1]} : vector<8x256xf32> to vector<8x128xf32>
      %26 = tpu.concatenate %17, %18, %19, %20, %21, %22, %23, %24, %25 in 0 : vector<8x128xf32>, vector<8x128xf32>, vector<8x128xf32>, vector<8x128xf32>, vector<8x128xf32>, vector<8x128xf32>, vector<8x128xf32>, vector<8x128xf32>, vector<8x128xf32> -> vector<72x128xf32>
      %c0_9 = arith.constant 0 : index
      %c0_10 = arith.constant 0 : index
      %c0_11 = arith.constant 0 : index
      %27 = vector.load %arg3[%c0_9, %c0_10, %c0_11] : memref<3x4x72xf32, #tpu.memory_space<vmem>>, vector<1x4x72xf32>
      %28 = vector.shape_cast %27 : vector<1x4x72xf32> to vector<4x72xf32>
      %cst_12 = arith.constant dense<0.000000e+00> : vector<4x128xf32>
      %29 = tpu.matmul %28, %26, %cst_12 {dimension_numbers = #tpu.dot_dimension_numbers<[1], [0], [0], [1], [0, 0, 1, 1], [], []>} : vector<4x72xf32>, vector<72x128xf32>, vector<4x128xf32> -> vector<4x128xf32>
      %30 = arith.addf %10, %29 : vector<4x128xf32>
      %c2_i32_13 = arith.constant 2 : i32
      %31 = arith.addi %arg1, %c2_i32_13 : i32
      %c1_i32 = arith.constant 1 : i32
      %32 = arith.addi %31, %c1_i32 : i32
      %c3_i32_14 = arith.constant 3 : i32
      %33 = arith.andi %32, %c3_i32_14 : i32
      %34 = arith.index_cast %33 : i32 to index
      %c0_15 = arith.constant 0 : index
      %c0_16 = arith.constant 0 : index
      %35 = vector.load %arg6[%34, %c0_15, %c0_16] : memref<4x8x256xf32, #tpu.memory_space<vmem>>, vector<1x8x256xf32>
      %36 = vector.shape_cast %35 : vector<1x8x256xf32> to vector<8x256xf32>
      %37 = vector.extract_strided_slice %36 {offsets = [0, 0], sizes = [8, 128], strides = [1, 1]} : vector<8x256xf32> to vector<8x128xf32>
      %38 = vector.extract_strided_slice %36 {offsets = [0, 1], sizes = [8, 128], strides = [1, 1]} : vector<8x256xf32> to vector<8x128xf32>
      %39 = vector.extract_strided_slice %36 {offsets = [0, 2], sizes = [8, 128], strides = [1, 1]} : vector<8x256xf32> to vector<8x128xf32>
      %40 = vector.extract_strided_slice %36 {offsets = [0, 10], sizes = [8, 128], strides = [1, 1]} : vector<8x256xf32> to vector<8x128xf32>
      %41 = vector.extract_strided_slice %36 {offsets = [0, 11], sizes = [8, 128], strides = [1, 1]} : vector<8x256xf32> to vector<8x128xf32>
      %42 = vector.extract_strided_slice %36 {offsets = [0, 12], sizes = [8, 128], strides = [1, 1]} : vector<8x256xf32> to vector<8x128xf32>
      %43 = vector.extract_strided_slice %36 {offsets = [0, 20], sizes = [8, 128], strides = [1, 1]} : vector<8x256xf32> to vector<8x128xf32>
      %44 = vector.extract_strided_slice %36 {offsets = [0, 21], sizes = [8, 128], strides = [1, 1]} : vector<8x256xf32> to vector<8x128xf32>
      %45 = vector.extract_strided_slice %36 {offsets = [0, 22], sizes = [8, 128], strides = [1, 1]} : vector<8x256xf32> to vector<8x128xf32>
      %46 = tpu.concatenate %37, %38, %39, %40, %41, %42, %43, %44, %45 in 0 : vector<8x128xf32>, vector<8x128xf32>, vector<8x128xf32>, vector<8x128xf32>, vector<8x128xf32>, vector<8x128xf32>, vector<8x128xf32>, vector<8x128xf32>, vector<8x128xf32> -> vector<72x128xf32>
      %c1 = arith.constant 1 : index
      %c0_17 = arith.constant 0 : index
      %c0_18 = arith.constant 0 : index
      %47 = vector.load %arg3[%c1, %c0_17, %c0_18] : memref<3x4x72xf32, #tpu.memory_space<vmem>>, vector<1x4x72xf32>
      %48 = vector.shape_cast %47 : vector<1x4x72xf32> to vector<4x72xf32>
      %cst_19 = arith.constant dense<0.000000e+00> : vector<4x128xf32>
      %49 = tpu.matmul %48, %46, %cst_19 {dimension_numbers = #tpu.dot_dimension_numbers<[1], [0], [0], [1], [0, 0, 1, 1], [], []>} : vector<4x72xf32>, vector<72x128xf32>, vector<4x128xf32> -> vector<4x128xf32>
      %50 = arith.addf %30, %49 : vector<4x128xf32>
      %c2_i32_20 = arith.constant 2 : i32
      %51 = arith.addi %arg1, %c2_i32_20 : i32
      %c2_i32_21 = arith.constant 2 : i32
      %52 = arith.addi %51, %c2_i32_21 : i32
      %c3_i32_22 = arith.constant 3 : i32
      %53 = arith.andi %52, %c3_i32_22 : i32
      %54 = arith.index_cast %53 : i32 to index
      %c0_23 = arith.constant 0 : index
      %c0_24 = arith.constant 0 : index
      %55 = vector.load %arg6[%54, %c0_23, %c0_24] : memref<4x8x256xf32, #tpu.memory_space<vmem>>, vector<1x8x256xf32>
      %56 = vector.shape_cast %55 : vector<1x8x256xf32> to vector<8x256xf32>
      %57 = vector.extract_strided_slice %56 {offsets = [0, 0], sizes = [8, 128], strides = [1, 1]} : vector<8x256xf32> to vector<8x128xf32>
      %58 = vector.extract_strided_slice %56 {offsets = [0, 1], sizes = [8, 128], strides = [1, 1]} : vector<8x256xf32> to vector<8x128xf32>
      %59 = vector.extract_strided_slice %56 {offsets = [0, 2], sizes = [8, 128], strides = [1, 1]} : vector<8x256xf32> to vector<8x128xf32>
      %60 = vector.extract_strided_slice %56 {offsets = [0, 10], sizes = [8, 128], strides = [1, 1]} : vector<8x256xf32> to vector<8x128xf32>
      %61 = vector.extract_strided_slice %56 {offsets = [0, 11], sizes = [8, 128], strides = [1, 1]} : vector<8x256xf32> to vector<8x128xf32>
      %62 = vector.extract_strided_slice %56 {offsets = [0, 12], sizes = [8, 128], strides = [1, 1]} : vector<8x256xf32> to vector<8x128xf32>
      %63 = vector.extract_strided_slice %56 {offsets = [0, 20], sizes = [8, 128], strides = [1, 1]} : vector<8x256xf32> to vector<8x128xf32>
      %64 = vector.extract_strided_slice %56 {offsets = [0, 21], sizes = [8, 128], strides = [1, 1]} : vector<8x256xf32> to vector<8x128xf32>
      %65 = vector.extract_strided_slice %56 {offsets = [0, 22], sizes = [8, 128], strides = [1, 1]} : vector<8x256xf32> to vector<8x128xf32>
      %66 = tpu.concatenate %57, %58, %59, %60, %61, %62, %63, %64, %65 in 0 : vector<8x128xf32>, vector<8x128xf32>, vector<8x128xf32>, vector<8x128xf32>, vector<8x128xf32>, vector<8x128xf32>, vector<8x128xf32>, vector<8x128xf32>, vector<8x128xf32> -> vector<72x128xf32>
      %c2 = arith.constant 2 : index
      %c0_25 = arith.constant 0 : index
      %c0_26 = arith.constant 0 : index
      %67 = vector.load %arg3[%c2, %c0_25, %c0_26] : memref<3x4x72xf32, #tpu.memory_space<vmem>>, vector<1x4x72xf32>
      %68 = vector.shape_cast %67 : vector<1x4x72xf32> to vector<4x72xf32>
      %cst_27 = arith.constant dense<0.000000e+00> : vector<4x128xf32>
      %69 = tpu.matmul %68, %66, %cst_27 {dimension_numbers = #tpu.dot_dimension_numbers<[1], [0], [0], [1], [0, 0, 1, 1], [], []>} : vector<4x72xf32>, vector<72x128xf32>, vector<4x128xf32> -> vector<4x128xf32>
      %70 = arith.addf %50, %69 : vector<4x128xf32>
      %c0_28 = arith.constant 0 : index
      %c0_29 = arith.constant 0 : index
      %71 = vector.load %arg4[%c0_28, %c0_29] : memref<4x1xf32, #tpu.memory_space<vmem>>, vector<4x1xf32>
      %72 = vector.broadcast %71 : vector<4x1xf32> to vector<4x128xf32>
      %73 = arith.addf %70, %72 : vector<4x128xf32>
      %cst_30 = arith.constant 0.000000e+00 : f32
      %74 = vector.broadcast %cst_30 : f32 to vector<4x128xf32>
      %75 = arith.cmpf ogt, %73, %74 : vector<4x128xf32>
      %cst_31 = arith.constant 1.000000e-01 : f32
      %76 = vector.broadcast %cst_31 : f32 to vector<4x128xf32>
      %77 = arith.mulf %76, %73 : vector<4x128xf32>
      %78 = arith.select %75, %73, %77 : vector<4x128xi1>, vector<4x128xf32>
      %c0_32 = arith.constant 0 : index
      %c0_33 = arith.constant 0 : index
      %c0_34 = arith.constant 0 : index
      %79 = vector.load %arg5[%c0_32, %c0_33, %c0_34] : memref<1x4x128xf32, #tpu.memory_space<vmem>>, vector<1x4x128xf32>
      %80 = vector.shape_cast %79 : vector<1x4x128xf32> to vector<4x128xf32>
      %81 = vector.shape_cast %78 : vector<4x128xf32> to vector<1x4x128xf32>
      tpu.vector_store %arg5[%c0_32, %c0_33, %c0_34], %81 {strides = array<i32>} : memref<1x4x128xf32, #tpu.memory_space<vmem>>, vector<1x4x128xf32>,
    } else {
    }
    return
  }
  func.func @transform_0(%arg0: i32, %arg1: i32) -> (i32, i32, i32) {
    %c0_i32 = arith.constant 0 : i32
    %c0_i32_0 = arith.constant 0 : i32
    return %arg0, %c0_i32, %arg1 : i32, i32, i32
  }
  func.func @transform_1(%arg0: i32, %arg1: i32) -> (i32, i32, i32) {
    %c0_i32 = arith.constant 0 : i32
    %c0_i32_0 = arith.constant 0 : i32
    %c0_i32_1 = arith.constant 0 : i32
    %c0_i32_2 = arith.constant 0 : i32
    return %c0_i32, %c0_i32_0, %c0_i32_1 : i32, i32, i32
  }
  func.func @transform_2(%arg0: i32, %arg1: i32) -> (i32, i32) {
    %c0_i32 = arith.constant 0 : i32
    %c0_i32_0 = arith.constant 0 : i32
    %c0_i32_1 = arith.constant 0 : i32
    return %c0_i32, %c0_i32_0 : i32, i32
  }
  func.func @transform_3(%arg0: i32, %arg1: i32) -> (i32, i32, i32) {
    %c2_i32 = arith.constant 2 : i32
    %0 = arith.subi %arg1, %c2_i32 : i32
    %c0_i32 = arith.constant 0 : i32
    %1 = arith.maxsi %0, %c0_i32 : i32
    %c0_i32_0 = arith.constant 0 : i32
    %c0_i32_1 = arith.constant 0 : i32
    return %arg0, %c0_i32_0, %1 : i32, i32, i32
  }
}

</mosaic_0001>

<bundles_post_ra>
// kernel: disparity_level_context.3
= control target key start
LH: loop header
LB: loop body
LE: loop exit
PB: predicated region body
PF: predicated region fallthrough
CT: control target
= control target key end

     0   :  { %s1168_s13 = smov 0   ;;  %s1170_s14 = smov 0   ;;  %s1281_s0 = inlined_call_operand.vmem [shape: f32[2,4,256], index: 0, kind: input, shape index: {}]   ;;  %s1282_s1 = inlined_call_operand.vmem [shape: f32[2,16,4], index: 1, kind: input, shape index: {}]   ;;  %s1283_s2 = inlined_call_operand.vmem [shape: f32[2,16,4], index: 2, kind: input, shape index: {}]   ;;  %s1284_s3 = inlined_call_operand.vmem [shape: f32[16,4], index: 3, kind: input, shape index: {}]   ;;  %s1285_s4 = inlined_call_operand.vmem [shape: f32[16,1], index: 4, kind: input, shape index: {}]   ;;  %s1286_s5 = inlined_call_operand.vmem [shape: f32[16,16], index: 5, kind: input, shape index: {}]   ;;  %s1287_s6 = inlined_call_operand.vmem [shape: f32[16,1], index: 6, kind: input, shape index: {}]   ;;  %s1288_s7 = inlined_call_operand.vmem [shape: f32[16,4], index: 7, kind: input, shape index: {}]   ;;  %s1289_s8 = inlined_call_operand.vmem [shape: f32[16,1], index: 8, kind: input, shape index: {}]   ;;  %s1290_s9 = inlined_call_operand.vmem [shape: f32[2,16,256], index: 9, kind: output, shape index: {0}]   ;;  %s1291_s10 = inlined_call_operand.vmem [shape: f32[2,16,256], index: 10, kind: output, shape index: {1}]  }
   0x1   :  { %s1172_s15 = smov 0  }
   0x2 LB: > { %s33_s16 = sadd.s32 1, %s1105_s14  ;;  %p1008_p0 = scmp.ge.s32.totalorder %s1109_s15, 1  ;;  %s1109_s15 = sphi %s1172_s15, %s21_s15   ;;  %s1105_s14 = sphi %s1170_s14, %s1293_s14   ;;  %s1101_s13 = sphi %s1168_s13, %s1292_s13  }
   0x3   : > { %p35_p1 = scmp.ge.s32.totalorder %s33_s16, 2  ;;  %p358_p2 = scmp.lt.s32.totalorder %s1109_s15, 3 }
   0x5   : > { %s1295_s16 = smov (%p35_p1, %s33_s16), 0  ;;  %p359_p3 = pnand %p1008_p0, %p358_p2 }
   0x6   : > { %p424_p4 = scmp.lt.s32.totalorder (!%p359_p3), %s1101_s13, 1 }
   0x7   : > { %362 = sbr.rel (%p359_p3) target bundleno = 321 (0x141), region = 56 }
   0xc   : > { %v464_v0 = vlaneseq  ;;  %v664_v1 = vld [vmem:[%s1285_s4 + $0x8] sm:$0xff]  ;;  %s1297_s13 = smov (!%p424_p4, %s1101_s13), 1  ;;  %v1111_v4 = vmov 0   ;;  %vm494_vm3 = vcmask 1043456   ;;  %vm487_vm6 = vcmask 31744   ;;  %v663_v14 = vld [vmem:[%s1285_s4] sm:$0xff] }
   0xd   : > { %1084 = vset.pattern.permute.xlu0 %v1111_v4  ;;  %1085 = vset.pattern.permute.xlu1 %v1111_v4  ;;  %s1051_s19 = sshll.u32 %s1297_s13, 3  ;;  %s1052_s20 = sshll.u32 %s1297_s13, 4  ;;  %v1112_v10 = vmov 0.0   ;;  %v601_v17 = vld [vmem:[%s1284_s3] sm:$0xff]  ;;  %v602_v18 = vld [vmem:[%s1284_s3 + $0x8] sm:$0xff]  ;;  %vm697_vm8 = vcmask 130048  }
   0xe   : > { %v465_v2 = vand.u32 127, %v464_v0  ;;  %v468_v3 = vshrl.u32 %v464_v0, 7  ;;  %672 = vperm.xlu0 %1084, %v664_v1   ;;  %1086 = vset.pattern.permute.xlu2 %v1111_v4  ;;  %s431_s23 = scalar_lea.vmem %s1281_s0, %s1051_s19  ;;  %s437_s26 = scalar_lea.vmem %s1282_s1, %s1052_s20  ;;  %v758_v22 = vld [vmem:[%s1288_s7] sm:$0xff]  ;;  %v759_v24 = vld [vmem:[%s1288_s7 + $0x8] sm:$0xff] }
   0xf   : > { %v463_v8 = vld [vmem:[%s431_s23] sm:$0xff]  ;;  %v486_v13 = vld [vmem:[%s437_s26 + $0x8] sm:$0xff]  ;;  %s442_s19 = scalar_lea.vmem %s1283_s2, %s1052_s20  ;;  %s1054_s21 = sshll.u32 %s1297_s13, 5 }
  0x10   : > { %v473_v5 = vmul.u32 64, %v468_v3  ;;  %v466_v6 = vadd.s32 128, %v465_v2  ;;  %604 = vst [vmem:[#allocation1] ss:$2 sm:$0xff] %v463_v8  ;;  %v485_v9 = vld [vmem:[%s437_s26] sm:$0xff]  ;;  %v548_v23 = vld [vmem:[%s442_s19 + $0x8] sm:$0xff]  ;;  %s461_s23 = scalar_lea.vmem %s1291_s10, %s1054_s21  ;;  %s451_s25 = scalar_lea.vmem %s1290_s9, %s1054_s21 }
  0x11   : > { %v547_v19 = vld [vmem:[%s442_s19] sm:$0xff]  ;;  %v686_v32 = vld [vmem:[%s1287_s6 + $0x8] sm:$0xff] }
  0x12   : > { %vm474_vm0 = vcmp.ge.s32.totalorder %v465_v2, %v473_v5  ;;  %v476_v7 = vadd.s32 64, %v473_v5  ;;  %vm475_vm1 = vcmp.ge.s32.totalorder %v466_v6, %v473_v5  ;;  %v685_v27 = vld [vmem:[%s1287_s6] sm:$0xff]  ;;  %v820_v33 = vld [vmem:[%s1289_s8 + $0x8] sm:$0xff] }
  0x13   : > { %v819_v28 = vld [vmem:[%s1289_s8] sm:$0xff]  ;;  %689 = vperm.xlu1 %1085, %v685_v27   ;;  %v684_v52 = vld [vmem:[%s1286_s5 + $0x8] sm:$0xff] }
  0x14   : > { %vm477_vm2 = vcmp.lt.s32.totalorder %v465_v2, %v476_v7  ;;  %vm478_vm4 = vcmp.lt.s32.totalorder %v466_v6, %v476_v7  ;;  %823 = vperm.xlu2 %1086, %v819_v28   ;;  %v683_v50 = vld [vmem:[%s1286_s5] sm:$0xff] }
  0x15   : > { %vm479_vm5 = vmand %vm474_vm0, %vm477_vm2 }
  0x16   : > { %v1019_v11 = vsel %vm479_vm5, 1.0, %v1112_v10  ;;  %vm480_vm7 = vmand %vm475_vm1, %vm478_vm4  ;;  %667 = vperm.xlu0 %1084, %v663_v14  }
  0x17   : > { %1021 = vmatpush.msk.msra.mxu0 %vm494_vm3, %v1019_v11  ;;  %v1020_v12 = vsel %vm480_vm7, 1.0, %v1112_v10  ;;  %1056 = vmatpush.msk.msra.mxu2 %vm494_vm3, %v1019_v11  ;;  %v605_v15 = vld.sshfl [vmem:[#allocation1] sm:$0xff pattern:$0x75316420] }
  0x18   : > { %1024 = vmatpush.msk.msra.mxu1 %vm494_vm3, %v1020_v12  ;;  %1022 = vmatmul.msk.f32.vlgmr.msra.gmra.mxu0 %vm487_vm6, %v485_v9  ;;  %v606_v16 = vld.sshfl [vmem:[#allocation1 + $0x8] sm:$0xff pattern:$0x75316420] }
  0x19   : > { %1025 = vmatmul.msk.f32.vlgmr.msra.gmra.mxu1 %vm487_vm6, %v485_v9  ;;  %1057 = vmatpush.msk.msra.mxu3 %vm494_vm3, %v1020_v12  ;;  %760 = vst [vmem:[#allocation1] ss:$2 sm:$0xff] %v463_v8 }
  0x1a   : > { %1023 = vmatmul.msk.f32.vlgmr.msra.gmra.mxu2 %vm487_vm6, %v486_v13  ;;  %1026 = vmatmul.msk.f32.vlgmr.msra.gmra.mxu3 %vm487_vm6, %v486_v13 }
  0x1b   : > { %1033 = vmatpush.msk.msrb.mxu0 %vm494_vm3, %v605_v15  ;;  %1036 = vmatpush.msk.msrb.mxu1 %vm494_vm3, %v606_v16 }
  0x1c   : > { %1027 = vmatpush.msk.msrb.mxu2 %vm494_vm3, %v1019_v11  ;;  %1030 = vmatpush.msk.msrb.mxu3 %vm494_vm3, %v1020_v12 }
  0x1d   : > { %694 = vperm.xlu1 %1085, %v686_v32   ;;  %828 = vperm.xlu2 %1086, %v820_v33  }
  0x20   : > { %1034 = vmatmul.msk.f32.vlgmr.msrb.gmra.mxu0 %vm487_vm6, %v601_v17  ;;  %v761_v20 = vld.sshfl [vmem:[#allocation1] sm:$0xff pattern:$0x75316420]  ;;  %v762_v21 = vld.sshfl [vmem:[#allocation1 + $0x8] sm:$0xff pattern:$0x75316420] }
  0x21   : > { %1037 = vmatmul.msk.f32.vlgmr.msrb.gmra.mxu1 %vm487_vm6, %v601_v17  ;;  %1043 = vmatpush.msk.msra.mxu0 %vm494_vm3, %v761_v20 }
  0x22   : > { %1028 = vmatmul.msk.f32.vlgmr.msrb.gmra.mxu2 %vm487_vm6, %v547_v19  ;;  %1031 = vmatmul.msk.f32.vlgmr.msrb.gmra.mxu3 %vm487_vm6, %v547_v19 }
  0x23   : > { %1046 = vmatpush.msk.msra.mxu1 %vm494_vm3, %v762_v21 }
  0x28   : > { %1035 = vmatmul.msk.f32.gmra.mxu0 %vm487_vm6, %v602_v18 }
  0x29   : > { %1038 = vmatmul.msk.f32.gmra.mxu1 %vm487_vm6, %v602_v18 }
  0x2a   : > { %1029 = vmatmul.msk.f32.gmra.mxu2 %vm487_vm6, %v548_v23  ;;  %1032 = vmatmul.msk.f32.gmra.mxu3 %vm487_vm6, %v548_v23 }
  0x30   : > { %1044 = vmatmul.msk.f32.vlgmr.msra.gmra.mxu0 %vm487_vm6, %v758_v22 }
  0x31   : > { %1047 = vmatmul.msk.f32.vlgmr.msra.gmra.mxu1 %vm487_vm6, %v758_v22 }
  0x38   : > { %1045 = vmatmul.msk.f32.gmra.mxu0 %vm487_vm6, %v759_v24 }
  0x39   : > { %1048 = vmatmul.msk.f32.gmra.mxu1 %vm487_vm6, %v759_v24 }
  0x6e   : > { %v824_v53 = vpop.permute.xlu2 %823 }
  0x77   : > { %v829_v5 = vpop.permute.xlu2 %828 }
  0x80   : > { %v673_v29 = vpop.permute.xlu0 %672 }
  0x85   : > { %v690_v11 = vpop.permute.xlu1 %689 }
  0x88   : > { %v668_v38 = vpop.permute.xlu0 %667 }
  0x8f   : > { %v695_v18 = vpop.permute.xlu1 %694 }
  0x95   : > { %v518_v25 = vpop.f32.mrf.mxu0 }
  0x96   : > { %v541_v26 = vpop.f32.mrf.mxu1 }
  0x9d   : > { %v634_v30 = vpop.f32.mrf.mxu0  ;;  %v521_v34 = vpop.f32.mrf.mxu2 }
  0x9e   : > { %v657_v31 = vpop.f32.mrf.mxu1  ;;  %v635_v35 = vadd.f32 %v634_v30, %v518_v25  ;;  %v544_v36 = vpop.f32.mrf.mxu3 }
  0x9f   : > { %v658_v37 = vadd.f32 %v657_v31, %v541_v26 }
  0xa0   : > { %v675_v43 = vadd.f32 %v668_v38, %v635_v35 }
  0xa1   : > { %v676_v45 = vadd.f32 %v668_v38, %v658_v37 }
  0xa2   : > { %v679_v49 = vmax.f32 %v675_v43, 0.0 }
  0xa3   : > { %v680_v51 = vmax.f32 %v676_v45, 0.0 }
  0xa5   : > { %v637_v39 = vpop.f32.mrf.mxu0  ;;  %v572_v54 = vpop.f32.mrf.mxu2 }
  0xa6   : > { %v638_v40 = vadd.f32 %v637_v39, %v521_v34  ;;  %v660_v41 = vpop.f32.mrf.mxu1  ;;  %v595_v55 = vpop.f32.mrf.mxu3 }
  0xa7   : > { %v661_v42 = vadd.f32 %v660_v41, %v544_v36 }
  0xa8   : > { %v677_v44 = vadd.f32 %v673_v29, %v638_v40 }
  0xa9   : > { %v678_v46 = vadd.f32 %v673_v29, %v661_v42 }
  0xaa   : > { %v681_v47 = vmax.f32 %v677_v44, 0.0 }
  0xab   : > { %v682_v48 = vmax.f32 %v678_v46, 0.0 }
  0xac   : > { %718 = vmatpush.msra.mxu2 %v681_v47 }
  0xad   : > { %741 = vmatpush.msra.mxu3 %v682_v48  ;;  %v790_v56 = vpop.f32.mrf.mxu0  ;;  %v575_v0 = vpop.f32.mrf.mxu2 }
  0xae   : > { %719 = vmatpush.msra.mxu2 %v679_v49  ;;  %v813_v57 = vpop.f32.mrf.mxu1  ;;  %v791_v58 = vadd.f32 %v790_v56, %v572_v54  ;;  %v598_v1 = vpop.f32.mrf.mxu3 }
  0xaf   : > { %742 = vmatpush.msra.mxu3 %v680_v51  ;;  %1039 = vmatmul.msk.f32.vlgmr.msra.gmra.mxu2 %vm697_vm8, %v683_v50  ;;  %v814_v59 = vadd.f32 %v813_v57, %v595_v55 }
  0xb0   : > { %1041 = vmatmul.msk.f32.vlgmr.msra.gmra.mxu3 %vm697_vm8, %v683_v50  ;;  %v831_v60 = vadd.f32 %v824_v53, %v791_v58 }
  0xb1   : > { %v832_v61 = vadd.f32 %v824_v53, %v814_v59 }
  0xb2   : > { %v835_v62 = vmax.f32 %v831_v60, 0.0 }
  0xb3   : > { %v836_v63 = vmax.f32 %v832_v61, 0.0 }
  0xb4   : > { %839 = vst [vmem:[%s461_s23] sm:$0xff] %v835_v62 }
  0xb5   : > { %840 = vst [vmem:[%s461_s23 + $0x8] sm:$0xff] %v836_v63  ;;  %v793_v2 = vpop.f32.mrf.mxu0 }
  0xb6   : > { %v794_v3 = vadd.f32 %v793_v2, %v575_v0  ;;  %v816_v4 = vpop.f32.mrf.mxu1 }
  0xb7   : > { %1040 = vmatmul.msk.f32.gmra.mxu2 %vm697_vm8, %v684_v52  ;;  %v817_v6 = vadd.f32 %v816_v4, %v598_v1 }
  0xb8   : > { %1042 = vmatmul.msk.f32.gmra.mxu3 %vm697_vm8, %v684_v52  ;;  %v833_v7 = vadd.f32 %v829_v5, %v794_v3 }
  0xb9   : > { %v834_v8 = vadd.f32 %v829_v5, %v817_v6 }
  0xba   : > { %v837_v9 = vmax.f32 %v833_v7, 0.0 }
  0xbb   : > { %v838_v10 = vmax.f32 %v834_v8, 0.0 }
  0xbc   : > { %841 = vst [vmem:[%s461_s23 + $0x10] sm:$0xff] %v837_v9 }
  0xbd   : > { %842 = vst [vmem:[%s461_s23 + $0x18] sm:$0xff] %v838_v10 }
 0x132   : > { %v721_v12 = vpop.f32.mrf.mxu2 }
 0x133   : > { %v722_v13 = vadd.f32 %v721_v12, %v690_v11  ;;  %v744_v14 = vpop.f32.mrf.mxu3 }
 0x134   : > { %v745_v15 = vadd.f32 %v744_v14, %v690_v11 }
 0x135   : > { %v750_v16 = vmax.f32 %v722_v13, 0.0 }
 0x136   : > { %v751_v17 = vmax.f32 %v745_v15, 0.0 }
 0x137   : > { %754 = vst [vmem:[%s451_s25] sm:$0xff] %v750_v16 }
 0x138   : > { %755 = vst [vmem:[%s451_s25 + $0x8] sm:$0xff] %v751_v17 }
 0x13a   : > { %v724_v19 = vpop.f32.mrf.mxu2 }
 0x13b   : > { %v725_v20 = vadd.f32 %v724_v19, %v695_v18  ;;  %v747_v21 = vpop.f32.mrf.mxu3 }
 0x13c   : > { %v748_v22 = vadd.f32 %v747_v21, %v695_v18 }
 0x13d   : > { %v752_v23 = vmax.f32 %v725_v20, 0.0 }
 0x13e   : > { %v753_v24 = vmax.f32 %v748_v22, 0.0 }
 0x13f   : > { %756 = vst [vmem:[%s451_s25 + $0x10] sm:$0xff] %v752_v23 }
 0x140   : > { %757 = vst [vmem:[%s451_s25 + $0x18] sm:$0xff] %v753_v24 }
 0x141 PF: > { %s21_s15 = sadd.s32 1, %s1109_s15   ;;  %s1292_s13 = smov %s1105_s14 }
 0x142   : > { %p18_p5 = scmp.ge.s32.totalorder %s21_s15, 4   ;;  %s1293_s14 = smov %s1295_s16 }
 0x144   :  { %20 = sbr.rel (!%p18_p5) target bundleno = 2 (0x2), region = 104 }

// kernel: disparity_level_context.4
= control target key start
LH: loop header
LB: loop body
LE: loop exit
PB: predicated region body
PF: predicated region fallthrough
CT: control target
= control target key end

     0   :  { %s2043_s30 = smov 0   ;;  %s2045_s10 = smov 0   ;;  %s2774_s0 = inlined_call_operand.vmem [shape: f32[2,4,256], index: 0, kind: input, shape index: {}]   ;;  %s2775_s1 = inlined_call_operand.vmem [shape: f32[2,16,256], index: 1, kind: input, shape index: {}]   ;;  %s2776_s2 = inlined_call_operand.vmem [shape: f32[2,16,256], index: 2, kind: input, shape index: {}]   ;;  %s2777_s3 = inlined_call_operand.vmem [shape: f32[16,4], index: 3, kind: input, shape index: {}]   ;;  %s2778_s4 = inlined_call_operand.vmem [shape: f32[16,1], index: 4, kind: input, shape index: {}]   ;;  %s2779_s5 = inlined_call_operand.vmem [shape: f32[16,16], index: 5, kind: input, shape index: {}]   ;;  %s2780_s6 = inlined_call_operand.vmem [shape: f32[16,1], index: 6, kind: input, shape index: {}]   ;;  %s2781_s7 = inlined_call_operand.vmem [shape: f32[4,16], index: 7, kind: input, shape index: {}]   ;;  %s2782_s8 = inlined_call_operand.vmem [shape: f32[4,1], index: 8, kind: input, shape index: {}]   ;;  %s2783_s9 = inlined_call_operand.vmem [shape: f32[2,4,256], index: 9, kind: output, shape index: {}]  }
   0x1   :  { %s2047_s11 = smov 0  }
   0x2 LB: > { %s38_s12 = sadd.s32 1, %s1984_s10  ;;  %p1710_p0 = scmp.ge.s32.totalorder %s1988_s11, 1  ;;  %s1988_s11 = sphi %s2047_s11, %s19_s11   ;;  %s1984_s10 = sphi %s2045_s10, %s2847_s10   ;;  %s1980_s30 = sphi %s2043_s30, %s2846_s30  }
   0x3   : > { %p40_p1 = scmp.ge.s32.totalorder %s38_s12, 2  ;;  %p349_p2 = scmp.lt.s32.totalorder %s1988_s11, 3 }
   0x5   : > { %s2849_s12 = smov (%p40_p1, %s38_s12), 0  ;;  %p350_p3 = pnand %p1710_p0, %p349_p2 }
   0x7   : > { %353 = sbr.rel (%p350_p3) target bundleno = 1044 (0x414), region = 56 }
   0xc   : > { %p412_p4 = scmp.lt.s32.totalorder %s1980_s30, 1  ;;  %v1990_v0 = vmov 0   ;;  %v459_v1 = vld [vmem:[%s2778_s4 + $0x8] sm:$0xff]  ;;  %v458_v3 = vld [vmem:[%s2778_s4] sm:$0xff]  ;;  %vm481_vm0 = vcmask 1043456   ;;  %vm474_vm1 = vcmask 31744  }
   0xd   : > { %1832 = vset.pattern.permute.xlu0 %v1990_v0  ;;  %1833 = vset.pattern.permute.xlu1 %v1990_v0  ;;  %v456_v4 = vld [vmem:[%s2777_s3] sm:$0xff]  ;;  %v457_v7 = vld [vmem:[%s2777_s3 + $0x8] sm:$0xff]  ;;  %vm550_vm2 = vcmask 130048   ;;  %vm1098_vm4 = vcmask 1040384  }
   0xe   : > { %s2851_s30 = smov (!%p412_p4, %s1980_s30), 1  ;;  %467 = vperm.xlu0 %1832, %v459_v1   ;;  %v539_v10 = vld [vmem:[%s2780_s6 + $0x8] sm:$0xff]  ;;  %v538_v12 = vld [vmem:[%s2780_s6] sm:$0xff] }
   0xf   : > { %s1797_s15 = sshll.u32 %s2851_s30, 3  ;;  %s1798_s25 = sshll.u32 %s2851_s30, 5  ;;  %547 = vperm.xlu1 %1833, %v539_v10   ;;  %v1522_v17 = vld [vmem:[%s2782_s8] sm:$0xf]  ;;  %v537_v30 = vld [vmem:[%s2779_s5 + $0x8] sm:$0xff] }
  0x10   : > { %s419_s18 = scalar_lea.vmem %s2774_s0, %s1797_s15  ;;  %s429_s28 = scalar_lea.vmem %s2775_s1, %s1798_s25  ;;  %v536_v24 = vld [vmem:[%s2779_s5] sm:$0xff] }
  0x11   : > { %v455_v2 = vld [vmem:[%s419_s18] sm:$0xff]  ;;  %v627_v9 = vld [vmem:[%s429_s28 + $0x10] sm:$0xff]  ;;  %v626_v13 = vld [vmem:[%s429_s28 + $0x8] sm:$0xff]  ;;  %s2635_s26 = scalar_lea.vmem %s2776_s2, %s1798_s25  ;;  %s449_s13 = scalar_lea.vmem %s2783_s9, %s1797_s15 }
  0x12   : > { %471 = vst [vmem:[#allocation1] ss:$2 sm:$0xff] %v455_v2  ;;  %v625_v8 = vld [vmem:[%s429_s28] sm:$0xff]  ;;  %v628_v15 = vld [vmem:[%s429_s28 + $0x18] sm:$0xff] }
  0x13   : > { %633 = vxpose.xlu2.b32.start [1/2] (short) %v625_v8, 128 }
  0x16   : > { %462 = vperm.xlu0 %1832, %v458_v3  }
  0x17   : > { %542 = vperm.xlu1 %1833, %v538_v12  }
  0x19   : > { %v472_v5 = vld.sshfl [vmem:[#allocation1] sm:$0xff pattern:$0x75316420]  ;;  %v473_v6 = vld.sshfl [vmem:[#allocation1 + $0x8] sm:$0xff pattern:$0x75316420] }
  0x1a   : > { %1719 = vmatpush.msk.msra.mxu2 %vm481_vm0, %v472_v5  ;;  %1722 = vmatpush.msk.msra.mxu1 %vm481_vm0, %v473_v6 }
  0x1b   : > { %1720 = vmatmul.msk.f32.vlgmr.msra.gmra.mxu2 %vm474_vm1, %v456_v4  ;;  %1723 = vmatmul.msk.f32.vlgmr.msra.gmra.mxu1 %vm474_vm1, %v456_v4 }
  0x1c   : > { %634 = vxpose.xlu2.b32.end [2/2] (short) %v627_v9, 128 }
  0x1f   : > { %1525 = vperm.xlu1 %1833, %v1522_v17  }
  0x23   : > { %1721 = vmatmul.msk.f32.gmra.mxu2 %vm474_vm1, %v457_v7  ;;  %1724 = vmatmul.msk.f32.gmra.mxu1 %vm474_vm1, %v457_v7 }
  0x38   : > { %665 = vxpose.xlu0.b32.start [1/2] (short) %v626_v13, 128 }
  0x40   : > { %666 = vxpose.xlu0.b32.end [2/2] (short) %v628_v15, 128 }
  0x80   : > { %v468_v11 = vpop.permute.xlu0 %467 }
  0x81   : > { %v548_v33 = vpop.permute.xlu1 %547 }
  0x88   : > { %v463_v18 = vpop.permute.xlu0 %462 }
  0x89   : > { %v543_v37 = vpop.permute.xlu1 %542 }
  0x98   : > { %v526_v14 = vpop.f32.mrf.mxu1 }
  0x99   : > { %v527_v20 = vadd.f32 %v526_v14, %v463_v18 }
  0x9b   : > { %v533_v23 = vmax.f32 %v527_v20, 0.0 }
  0x9e   : > { %v503_v16 = vpop.f32.mrf.mxu2 }
  0x9f   : > { %v504_v26 = vadd.f32 %v503_v16, %v463_v18 }
  0xa0   : > { %v529_v19 = vpop.f32.mrf.mxu1 }
  0xa1   : > { %v530_v21 = vadd.f32 %v529_v19, %v468_v11  ;;  %v532_v29 = vmax.f32 %v504_v26, 0.0 }
  0xa3   : > { %v535_v22 = vmax.f32 %v530_v21, 0.0 }
  0xa5   : > { %594 = vmatpush.msra.mxu3 %v535_v22 }
  0xa6   : > { %v506_v25 = vpop.f32.mrf.mxu2 }
  0xa7   : > { %v507_v27 = vadd.f32 %v506_v25, %v468_v11  ;;  %595 = vmatpush.msra.mxu3 %v533_v23 }
  0xa8   : > { %1727 = vmatmul.msk.f32.vlgmr.msra.gmra.mxu3 %vm550_vm2, %v536_v24 }
  0xa9   : > { %v534_v28 = vmax.f32 %v507_v27, 0.0 }
  0xab   : > { %571 = vmatpush.msrb.mxu2 %v534_v28 }
  0xad   : > { %572 = vmatpush.msrb.mxu2 %v532_v29  ;;  %v649_v31 = vpop.trf.xlu2 }
  0xae   : > { %1725 = vmatmul.msk.f32.vlgmr.msrb.gmra.mxu2 %vm550_vm2, %v536_v24 }
  0xb0   : > { %1728 = vmatmul.msk.f32.gmra.mxu3 %vm550_vm2, %v537_v30 }
  0xb5   : > { %v650_v32 = vpop.trf.xlu2 }
  0xb6   : > { %1726 = vmatmul.msk.f32.gmra.mxu2 %vm550_vm2, %v537_v30 }
  0xbd   : > { %v651_v35 = vpop.trf.xlu2 }
  0xc5   : > { %v652_v43 = vpop.trf.xlu2 }
  0xcd   : > { %v653_v50 = vpop.trf.xlu2 }
  0xd5   : > { %v654_v53 = vpop.trf.xlu2 }
  0xdc   : > { %v2109_v47 = vpop.trf.xlu0 }
  0xdd   : > { %v655_v55 = vpop.trf.xlu2 }
  0xe4   : > { %v2113_v51 = vpop.trf.xlu0 }
  0xe5   : > { %v656_v57 = vpop.trf.xlu2 }
  0xec   : > { %v2117_v52 = vpop.trf.xlu0 }
  0xed   : > { %v657_v59 = vpop.trf.xlu2 }
  0xf4   : > { %v2121_v54 = vpop.trf.xlu0 }
  0xf5   : > { %v658_v62 = vpop.trf.xlu2 }
  0xfc   : > { %v2125_v56 = vpop.trf.xlu0 }
  0xfd   : > { %v659_v0 = vpop.trf.xlu2 }
 0x104   : > { %v686_v58 = vpop.trf.xlu0 }
 0x105   : > { %v660_v2 = vpop.trf.xlu2 }
 0x10c   : > { %v687_v60 = vpop.trf.xlu0 }
 0x10d   : > { %v661_v4 = vpop.trf.xlu2 }
 0x114   : > { %v688_v61 = vpop.trf.xlu0 }
 0x115   : > { %v662_v6 = vpop.trf.xlu2 }
 0x11c   : > { %v689_v63 = vpop.trf.xlu0 }
 0x11d   : > { %v663_v8 = vpop.trf.xlu2 }
 0x124   : > { %v690_v1 = vpop.trf.xlu0 }
 0x125   : > { %v664_v11 = vpop.trf.xlu2 }
 0x12b   : > { %v597_v34 = vpop.f32.mrf.mxu3 }
 0x12c   : > { %v598_v39 = vadd.f32 %v597_v34, %v543_v37  ;;  %v691_v3 = vpop.trf.xlu0 }
 0x12e   : > { %v604_v42 = vmax.f32 %v598_v39, 0.0 }
 0x131   : > { %v574_v36 = vpop.f32.mrf.mxu2 }
 0x132   : > { %v575_v45 = vadd.f32 %v574_v36, %v543_v37 }
 0x133   : > { %v600_v38 = vpop.f32.mrf.mxu3 }
 0x134   : > { %v601_v40 = vadd.f32 %v600_v38, %v548_v33  ;;  %v603_v49 = vmax.f32 %v575_v45, 0.0  ;;  %v692_v5 = vpop.trf.xlu0 }
 0x136   : > { %v606_v41 = vmax.f32 %v601_v40, 0.0 }
 0x138   : > { %921 = vmatpush.msrb.mxu1 %v606_v41  ;;  %1803 = vmatpush.msrb.mxu3 %v606_v41 }
 0x139   : > { %v577_v44 = vpop.f32.mrf.mxu2 }
 0x13a   : > { %v578_v46 = vadd.f32 %v577_v44, %v548_v33  ;;  %922 = vmatpush.msrb.mxu1 %v604_v42  ;;  %1804 = vmatpush.msrb.mxu3 %v604_v42 }
 0x13b   : > { %1761 = vmatmul.msk.f32.vlgmr.msrb.gmra.mxu1 %vm550_vm2, %v649_v31  ;;  %1781 = vmatmul.msk.f32.vlgmr.msrb.gmra.mxu3 %vm550_vm2, %v2125_v56 }
 0x13c   : > { %v605_v48 = vmax.f32 %v578_v46, 0.0  ;;  %v693_v7 = vpop.trf.xlu0 }
 0x13e   : > { %808 = vmatpush.msra.mxu0 %v605_v48  ;;  %1801 = vmatpush.msra.mxu2 %v605_v48 }
 0x140   : > { %809 = vmatpush.msra.mxu0 %v603_v49  ;;  %1802 = vmatpush.msra.mxu2 %v603_v49 }
 0x141   : > { %1729 = vmatmul.msk.f32.vlgmr.msra.gmra.mxu0 %vm550_vm2, %v649_v31  ;;  %1750 = vmatmul.msk.f32.vlgmr.msra.gmra.mxu2 %vm550_vm2, %v686_v58 }
 0x143   : > { %1762 = vmatmul.msk.f32.gmra.mxu1 %vm550_vm2, %v650_v32  ;;  %1782 = vmatmul.msk.f32.gmra.mxu3 %vm550_vm2, %v686_v58 }
 0x144   : > { %v694_v9 = vpop.trf.xlu0 }
 0x149   : > { %1730 = vmatmul.msk.f32.gmra.mxu0 %vm550_vm2, %v650_v32  ;;  %1751 = vmatmul.msk.f32.gmra.mxu2 %vm550_vm2, %v687_v60 }
 0x14b   : > { %1763 = vmatmul.msk.f32.gmra.mxu1 %vm550_vm2, %v651_v35  ;;  %1783 = vmatmul.msk.f32.gmra.mxu3 %vm550_vm2, %v687_v60 }
 0x14c   : > { %v695_v10 = vpop.trf.xlu0 }
 0x151   : > { %1731 = vmatmul.msk.f32.gmra.mxu0 %vm550_vm2, %v651_v35  ;;  %1752 = vmatmul.msk.f32.gmra.mxu2 %vm550_vm2, %v688_v61 }
 0x153   : > { %1764 = vmatmul.msk.f32.gmra.mxu1 %vm550_vm2, %v652_v43  ;;  %1784 = vmatmul.msk.f32.gmra.mxu3 %vm550_vm2, %v688_v61 }
 0x154   : > { %v696_v12 = vpop.trf.xlu0 }
 0x159   : > { %1732 = vmatmul.msk.f32.gmra.mxu0 %vm550_vm2, %v652_v43  ;;  %1753 = vmatmul.msk.f32.gmra.mxu2 %vm550_vm2, %v689_v63 }
 0x15b   : > { %1765 = vmatmul.msk.f32.gmra.mxu1 %vm550_vm2, %v653_v50  ;;  %1785 = vmatmul.msk.f32.gmra.mxu3 %vm550_vm2, %v689_v63 }
 0x161   : > { %1733 = vmatmul.msk.f32.gmra.mxu0 %vm550_vm2, %v653_v50  ;;  %1754 = vmatmul.msk.f32.gmra.mxu2 %vm550_vm2, %v690_v1 }
 0x163   : > { %1766 = vmatmul.msk.f32.gmra.mxu1 %vm550_vm2, %v654_v53  ;;  %1786 = vmatmul.msk.f32.gmra.mxu3 %vm550_vm2, %v690_v1 }
 0x169   : > { %1734 = vmatmul.msk.f32.gmra.mxu0 %vm550_vm2, %v654_v53  ;;  %1755 = vmatmul.msk.f32.gmra.mxu2 %vm550_vm2, %v691_v3 }
 0x16b   : > { %1767 = vmatmul.msk.f32.gmra.mxu1 %vm550_vm2, %v655_v55  ;;  %1787 = vmatmul.msk.f32.gmra.mxu3 %vm550_vm2, %v691_v3 }
 0x171   : > { %1735 = vmatmul.msk.f32.gmra.mxu0 %vm550_vm2, %v655_v55  ;;  %1756 = vmatmul.msk.f32.gmra.mxu2 %vm550_vm2, %v692_v5 }
 0x173   : > { %1768 = vmatmul.msk.f32.gmra.mxu1 %vm550_vm2, %v656_v57  ;;  %1788 = vmatmul.msk.f32.gmra.mxu3 %vm550_vm2, %v692_v5 }
 0x179   : > { %1736 = vmatmul.msk.f32.gmra.mxu0 %vm550_vm2, %v656_v57  ;;  %1757 = vmatmul.msk.f32.gmra.mxu2 %vm550_vm2, %v693_v7 }
 0x17b   : > { %1769 = vmatmul.msk.f32.gmra.mxu1 %vm550_vm2, %v657_v59  ;;  %1789 = vmatmul.msk.f32.gmra.mxu3 %vm550_vm2, %v693_v7 }
 0x181   : > { %1737 = vmatmul.msk.f32.gmra.mxu0 %vm550_vm2, %v657_v59  ;;  %1758 = vmatmul.msk.f32.gmra.mxu2 %vm550_vm2, %v694_v9 }
 0x183   : > { %1770 = vmatmul.msk.f32.gmra.mxu1 %vm550_vm2, %v658_v62  ;;  %1790 = vmatmul.msk.f32.gmra.mxu3 %vm550_vm2, %v694_v9 }
 0x189   : > { %1738 = vmatmul.msk.f32.gmra.mxu0 %vm550_vm2, %v658_v62  ;;  %1759 = vmatmul.msk.f32.gmra.mxu2 %vm550_vm2, %v695_v10 }
 0x18b   : > { %1771 = vmatmul.msk.f32.gmra.mxu1 %vm550_vm2, %v659_v0  ;;  %1791 = vmatmul.msk.f32.gmra.mxu3 %vm550_vm2, %v695_v10 }
 0x191   : > { %1739 = vmatmul.msk.f32.gmra.mxu0 %vm550_vm2, %v659_v0  ;;  %1760 = vmatmul.msk.f32.gmra.mxu2 %vm550_vm2, %v696_v12 }
 0x193   : > { %1772 = vmatmul.msk.f32.gmra.mxu1 %vm550_vm2, %v660_v2  ;;  %1792 = vmatmul.msk.f32.gmra.mxu3 %vm550_vm2, %v696_v12 }
 0x199   : > { %1740 = vmatmul.msk.f32.gmra.mxu0 %vm550_vm2, %v660_v2 }
 0x19b   : > { %1773 = vmatmul.msk.f32.gmra.mxu1 %vm550_vm2, %v661_v4 }
 0x1a1   : > { %1741 = vmatmul.msk.f32.gmra.mxu0 %vm550_vm2, %v661_v4 }
 0x1a3   : > { %1774 = vmatmul.msk.f32.gmra.mxu1 %vm550_vm2, %v662_v6 }
 0x1a9   : > { %1742 = vmatmul.msk.f32.gmra.mxu0 %vm550_vm2, %v662_v6 }
 0x1ab   : > { %1775 = vmatmul.msk.f32.gmra.mxu1 %vm550_vm2, %v663_v8 }
 0x1b1   : > { %1743 = vmatmul.msk.f32.gmra.mxu0 %vm550_vm2, %v663_v8 }
 0x1b3   : > { %1776 = vmatmul.msk.f32.gmra.mxu1 %vm550_vm2, %v664_v11 }
 0x1b8   : > { %v2171_v13 = vpop.f32.mrf.mxu1 }
 0x1b9   : > { %1744 = vmatmul.msk.f32.gmra.mxu0 %vm550_vm2, %v664_v11 }
 0x1bb   : > { %1777 = vmatmul.msk.f32.gmra.mxu1 %vm550_vm2, %v2109_v47 }
 0x1be   : > { %v2178_v14 = vpop.f32.mrf.mxu0  ;;  %v2218_v26 = vpop.f32.mrf.mxu3 }
 0x1bf   : > { %2804 = vst [vmem:[#allocation6_spill] sm:$0xff] %v2218_v26 }
 0x1c0   : > { %v2180_v15 = vpop.f32.mrf.mxu1 }
 0x1c1   : > { %1745 = vmatmul.msk.f32.gmra.mxu0 %vm550_vm2, %v2109_v47 }
 0x1c3   : > { %1778 = vmatmul.msk.f32.gmra.mxu1 %vm550_vm2, %v2113_v51 }
 0x1c4   : > { %v2236_v35 = vpop.f32.mrf.mxu2 }
 0x1c6   : > { %v2186_v16 = vpop.f32.mrf.mxu0  ;;  %v2226_v30 = vpop.f32.mrf.mxu3 }
 0x1c7   : > { %2805 = vst [vmem:[#allocation7_spill] sm:$0xff] %v2226_v30 }
 0x1c8   : > { %v2188_v17 = vpop.f32.mrf.mxu1 }
 0x1c9   : > { %1746 = vmatmul.msk.f32.gmra.mxu0 %vm550_vm2, %v2113_v51  ;;  %v1058_v60 = vmax.f32 %v2171_v13, %v2188_v17 }
 0x1cb   : > { %1779 = vmatmul.msk.f32.gmra.mxu1 %vm550_vm2, %v2117_v52 }
 0x1cc   : > { %v2244_v39 = vpop.f32.mrf.mxu2 }
 0x1ce   : > { %v2194_v18 = vpop.f32.mrf.mxu0  ;;  %v2234_v34 = vpop.f32.mrf.mxu3 }
 0x1cf   : > { %2807 = vst [vmem:[#allocation9_spill] sm:$0xff] %v2234_v34 }
 0x1d0   : > { %v2196_v19 = vpop.f32.mrf.mxu1 }
 0x1d1   : > { %1747 = vmatmul.msk.f32.gmra.mxu0 %vm550_vm2, %v2117_v52  ;;  %v1059_v4 = vmax.f32 %v2180_v15, %v2196_v19 }
 0x1d3   : > { %1780 = vmatmul.msk.f32.gmra.mxu1 %vm550_vm2, %v2121_v54 }
 0x1d4   : > { %v2254_v44 = vpop.f32.mrf.mxu2 }
 0x1d6   : > { %v2202_v20 = vpop.f32.mrf.mxu0  ;;  %v2242_v38 = vpop.f32.mrf.mxu3 }
 0x1d7   : > { %2809 = vst [vmem:[#allocation11_spill] sm:$0xff] %v2242_v38  ;;  %v1022_v10 = vmax.f32 %v2186_v16, %v2202_v20 }
 0x1d8   : > { %v2204_v21 = vpop.f32.mrf.mxu1 }
 0x1d9   : > { %1748 = vmatmul.msk.f32.gmra.mxu0 %vm550_vm2, %v2121_v54  ;;  %v1060_v61 = vmax.f32 %v1058_v60, %v2204_v21 }
 0x1dc   : > { %v2264_v49 = vpop.f32.mrf.mxu2 }
 0x1de   : > { %v2208_v22 = vpop.f32.mrf.mxu0  ;;  %v2250_v42 = vpop.f32.mrf.mxu3 }
 0x1df   : > { %2810 = vst [vmem:[#allocation12_spill] sm:$0xff] %v2250_v42 }
 0x1e0   : > { %v2210_v23 = vpop.f32.mrf.mxu1 }
 0x1e1   : > { %1749 = vmatmul.msk.f32.gmra.mxu0 %vm550_vm2, %v2125_v56  ;;  %v1061_v6 = vmax.f32 %v1059_v4, %v2210_v23 }
 0x1e4   : > { %v2272_v53 = vpop.f32.mrf.mxu2 }
 0x1e6   : > { %v2214_v24 = vpop.f32.mrf.mxu0  ;;  %v2260_v47 = vpop.f32.mrf.mxu3 }
 0x1e7   : > { %2812 = vst [vmem:[#allocation14_spill] sm:$0xff] %v2260_v47 }
 0x1e8   : > { %v2216_v25 = vpop.f32.mrf.mxu1 }
 0x1e9   : > { %v1062_v63 = vmax.f32 %v1060_v61, %v2216_v25 }
 0x1ec   : > { %v2280_v57 = vpop.f32.mrf.mxu2 }
 0x1ed   : > { %2816 = vst [vmem:[#allocation18_spill] sm:$0xff] %v2280_v57 }
 0x1ee   : > { %v2220_v27 = vpop.f32.mrf.mxu0  ;;  %v2270_v52 = vpop.f32.mrf.mxu3 }
 0x1ef   : > { %2814 = vst [vmem:[#allocation16_spill] sm:$0xff] %v2270_v52 }
 0x1f0   : > { %v2222_v28 = vpop.f32.mrf.mxu1 }
 0x1f1   : > { %v1063_v8 = vmax.f32 %v1061_v6, %v2222_v28 }
 0x1f4   : > { %v2294_v1 = vpop.f32.mrf.mxu2 }
 0x1f6   : > { %v2224_v29 = vpop.f32.mrf.mxu0  ;;  %v2278_v56 = vpop.f32.mrf.mxu3 }
 0x1f7   : > { %2815 = vst [vmem:[#allocation17_spill] sm:$0xff] %v2278_v56 }
 0x1f8   : > { %v2228_v31 = vpop.f32.mrf.mxu1 }
 0x1f9   : > { %v1064_v2 = vmax.f32 %v1062_v63, %v2228_v31  ;;  %v1024_v63 = vmax.f32 %v1022_v10, %v2214_v24 }
 0x1fc   : > { %v2317_v4 = vpop.f32.mrf.mxu2 }
 0x1fe   : > { %v2230_v32 = vpop.f32.mrf.mxu0  ;;  %v2289_v62 = vpop.f32.mrf.mxu3 }
 0x1ff   : > { %2818 = vst [vmem:[#allocation20_spill] sm:$0xff] %v2289_v62 }
 0x200   : > { %v2232_v33 = vpop.f32.mrf.mxu1 }
 0x201   : > { %2806 = vst [vmem:[#allocation8_spill] sm:$0xff] %v2232_v33  ;;  %v1065_v60 = vmax.f32 %v1063_v8, %v2232_v33  ;;  %v1021_v8 = vmax.f32 %v2178_v14, %v2194_v18 }
 0x206   : > { %v2238_v36 = vpop.f32.mrf.mxu0  ;;  %v2310_v12 = vpop.f32.mrf.mxu3 }
 0x207   : > { %2819 = vst [vmem:[#allocation21_spill] sm:$0xff] %v2310_v12 }
 0x208   : > { %v2240_v37 = vpop.f32.mrf.mxu1 }
 0x209   : > { %2808 = vst [vmem:[#allocation10_spill] sm:$0xff] %v2240_v37  ;;  %v1066_v5 = vmax.f32 %v1064_v2, %v2240_v37  ;;  %v611_v37 = vlaneseq }
 0x20b   : > { %vm2334_vm3 = vcmp.lt.s32.totalorder %v611_v37, 256  ;;  %v1992_v37 = vmov 0.0  }
 0x20c   : > { %616 = vst.msk [vmem:[#allocation4] sm:$0x3] %vm2334_vm3, %v1992_v37 }
 0x20e   : > { %v2246_v40 = vpop.f32.mrf.mxu0 }
 0x210   : > { %v2248_v41 = vpop.f32.mrf.mxu1 }
 0x216   : > { %v2252_v43 = vpop.f32.mrf.mxu0 }
 0x218   : > { %v2256_v45 = vpop.f32.mrf.mxu1 }
 0x219   : > { %2811 = vst [vmem:[#allocation13_spill] sm:$0xff] %v2256_v45  ;;  %v1068_v7 = vmax.f32 %v1066_v5, %v2256_v45  ;;  %v1067_v5 = vmax.f32 %v1065_v60, %v2248_v41  ;;  %v1023_v60 = vmax.f32 %v1021_v8, %v2208_v22 }
 0x21e   : > { %v2258_v46 = vpop.f32.mrf.mxu0 }
 0x220   : > { %v2262_v48 = vpop.f32.mrf.mxu1 }
 0x226   : > { %v2266_v50 = vpop.f32.mrf.mxu0 }
 0x228   : > { %v2268_v51 = vpop.f32.mrf.mxu1 }
 0x229   : > { %2813 = vst [vmem:[#allocation15_spill] sm:$0xff] %v2268_v51  ;;  %v1070_v9 = vmax.f32 %v1068_v7, %v2268_v51  ;;  %v1026_v7 = vmax.f32 %v1024_v63, %v2224_v29  ;;  %v1069_v51 = vmax.f32 %v1067_v5, %v2262_v48 }
 0x22e   : > { %v2274_v54 = vpop.f32.mrf.mxu0 }
 0x230   : > { %v2276_v55 = vpop.f32.mrf.mxu1 }
 0x231   : > { %v1071_v10 = vmax.f32 %v1069_v51, %v2276_v55  ;;  %v1991_v51 = vmov -inf  }
 0x232   : > { %615 = vst.msk [vmem:[#allocation3] sm:$0x3] %vm2334_vm3, %v1991_v51 }
 0x236   : > { %v2282_v58 = vpop.f32.mrf.mxu0 }
 0x238   : > { %v2284_v59 = vpop.f32.mrf.mxu1 }
 0x239   : > { %2817 = vst [vmem:[#allocation19_spill] sm:$0xff] %v2284_v59  ;;  %v1072_v61 = vmax.f32 %v1070_v9, %v2284_v59  ;;  %v1028_v9 = vmax.f32 %v1026_v7, %v2238_v36  ;;  %v2340_v7 = vpop.f32.mrf.mxu3 }
 0x23a   : > { %2824 = vst [vmem:[#allocation24_spill] sm:$0xff] %v2340_v7 }
 0x23e   : > { %v2292_v0 = vpop.f32.mrf.mxu0 }
 0x240   : > { %v2297_v3 = vpop.f32.mrf.mxu1 }
 0x241   : > { %v1073_v63 = vmax.f32 %v1071_v10, %v2297_v3 }
 0x246   : > { %v2308_v11 = vpop.f32.mrf.mxu0 }
 0x248   : > { %v2315_v2 = vpop.f32.mrf.mxu1 }
 0x249   : > { %2820 = vst [vmem:[#allocation22_spill] sm:$0xff] %v2315_v2  ;;  %v1074_v6 = vmax.f32 %v1072_v61, %v2315_v2  ;;  %v1030_v61 = vmax.f32 %v1028_v9, %v2252_v43 }
 0x24b   : > { %v1076_v45 = vmax.f32 %v1074_v6, %v2218_v26  ;;  %v1032_v8 = vmax.f32 %v1030_v61, %v2266_v50 }
 0x24d   : > { %v1078_v59 = vmax.f32 %v1076_v45, %v2234_v34  ;;  %v1025_v45 = vmax.f32 %v1023_v60, %v2220_v27  ;;  %v2350_v34 = vpop.f32.mrf.mxu2  ;;  %v1034_v2 = vmax.f32 %v1032_v8, %v2282_v58 }
 0x24e   : > { %v2329_v33 = vpop.f32.mrf.mxu0 }
 0x24f   : > { %v1080_v10 = vmax.f32 %v1078_v59, %v2250_v42  ;;  %v1027_v26 = vmax.f32 %v1025_v45, %v2230_v32  ;;  %v1036_v61 = vmax.f32 %v1034_v2, %v2308_v11 }
 0x250   : > { %v2338_v6 = vpop.f32.mrf.mxu1 }
 0x251   : > { %2823 = vst [vmem:[#allocation23_spill] sm:$0xff] %v2338_v6  ;;  %v1075_v9 = vmax.f32 %v1073_v63, %v2338_v6  ;;  %v1029_v60 = vmax.f32 %v1027_v26, %v2246_v40  ;;  %v1082_v59 = vmax.f32 %v1080_v10, %v2270_v52 }
 0x253   : > { %v1077_v51 = vmax.f32 %v1075_v9, %v2226_v30  ;;  %v1031_v37 = vmax.f32 %v1029_v60, %v2258_v46  ;;  %v1084_v9 = vmax.f32 %v1082_v59, %v2289_v62  ;;  %v2368_v30 = vpop.f32.mrf.mxu3 }
 0x254   : > { %2825 = vst [vmem:[#allocation25_spill] sm:$0xff] %v2368_v30 }
 0x255   : > { %v1079_v63 = vmax.f32 %v1077_v51, %v2242_v38  ;;  %v1033_v8 = vmax.f32 %v1031_v37, %v2274_v54  ;;  %v2373_v52 = vpop.f32.mrf.mxu2  ;;  %v2392_v38 = vld [vmem:[#allocation3] sm:$0x3] }
 0x256   : > { %v2359_v42 = vpop.f32.mrf.mxu0 }
 0x257   : > { %v1081_v6 = vmax.f32 %v1079_v63, %v2260_v47  ;;  %v1038_v45 = vmax.f32 %v1036_v61, %v2359_v42  ;;  %v1035_v10 = vmax.f32 %v1033_v8, %v2292_v0  ;;  %v1086_v63 = vmax.f32 %v1084_v9, %v2340_v7 }
 0x259   : > { %v1040_v26 = vmax.f32 %v1038_v45, %v2236_v35  ;;  %v1083_v2 = vmax.f32 %v1081_v6, %v2278_v56  ;;  %v1037_v61 = vmax.f32 %v1035_v10, %v2329_v33 }
 0x25b   : > { %v1042_v51 = vmax.f32 %v1040_v26, %v2254_v44  ;;  %v1085_v60 = vmax.f32 %v1083_v2, %v2310_v12 }
 0x25d   : > { %v1087_v59 = vmax.f32 %v1085_v60, %v2368_v30  ;;  %v1044_v37 = vmax.f32 %v1042_v51, %v2272_v53  ;;  %v2387_v60 = vpop.f32.mrf.mxu2 }
 0x25e   : > { %v2379_v45 = vpop.f32.mrf.mxu0 }
 0x25f   : > { %v1088_v6 = vmax.f32 %v1086_v63, %v1087_v59  ;;  %v1039_v62 = vmax.f32 %v1037_v61, %v2379_v45  ;;  %v1046_v2 = vmax.f32 %v1044_v37, %v2294_v1 }
 0x261   : > { %v1089_v8 = vrot.slane %v1088_v6, 4  ;;  %v1041_v26 = vmax.f32 %v1039_v62, %v2244_v39  ;;  %v1048_v9 = vmax.f32 %v1046_v2, %v2350_v34 }
 0x263   : > { %v1090_v12 = vmax.f32 %v1088_v6, %v1089_v8  ;;  %v1043_v56 = vmax.f32 %v1041_v26, %v2264_v49  ;;  %v1050_v61 = vmax.f32 %v1048_v9, %v2387_v60 }
 0x265   : > { %v1045_v10 = vmax.f32 %v1043_v56, %v2280_v57  ;;  %v1091_v51 = vrot.slane %v1090_v12, 2 }
 0x267   : > { %v1047_v30 = vmax.f32 %v1045_v10, %v2317_v4  ;;  %v1092_v59 = vmax.f32 %v1090_v12, %v1091_v51 }
 0x269   : > { %v1049_v63 = vmax.f32 %v1047_v30, %v2373_v52  ;;  %v1093_v37 = vrot.slane %v1092_v59, 1 }
 0x26b   : > { %v1051_v62 = vmax.f32 %v1049_v63, %v1050_v61  ;;  %v1094_v26 = vmax.f32 %v1092_v59, %v1093_v37 }
 0x26d   : > { %v1052_v7 = vrot.slane %v1051_v62, 4  ;;  %v1097_v2 = vrot.slane %v1094_v26, 7 }
 0x26f   : > { %v1053_v6 = vmax.f32 %v1051_v62, %v1052_v7 }
 0x271   : > { %v1054_v8 = vrot.slane %v1053_v6, 2 }
 0x273   : > { %v1055_v47 = vmax.f32 %v1053_v6, %v1054_v8 }
 0x275   : > { %v1056_v56 = vrot.slane %v1055_v47, 1 }
 0x277   : > { %v1057_v57 = vmax.f32 %v1055_v47, %v1056_v56 }
 0x279   : > { %v1099_v10 = vsel %vm1098_vm4, %v1057_v57, %v1097_v2 }
 0x27a   : > { %v2396_v30 = vmax.f32 %v2392_v38, %v1099_v10 }
 0x27c   : > { %v1102_v12 = vsub.f32 %v2392_v38, %v2396_v30  ;;  %1502 = vst.msk [vmem:[#allocation3] sm:$0x3] %vm2334_vm3, %v2396_v30  ;;  %v2404_v7 = vperm.slane %v2396_v30, 0  ;;  %v2407_v9 = vperm.slane %v2396_v30, 1  ;;  %v1302_v30 = vld [vmem:[#allocation4] sm:$0x3] }
 0x27e   : > { %v1110_v47 = vsub.f32 %v2178_v14, %v2404_v7  ;;  %v1111_v57 = vsub.f32 %v2171_v13, %v2407_v9  ;;  %v1112_v51 = vsub.f32 %v2186_v16, %v2404_v7  ;;  %v1113_v63 = vsub.f32 %v2180_v15, %v2407_v9 }
 0x27f   : > { %v1114_v61 = vsub.f32 %v2194_v18, %v2404_v7  ;;  %v1115_v62 = vsub.f32 %v2188_v17, %v2407_v9  ;;  %v1116_v14 = vsub.f32 %v2202_v20, %v2404_v7  ;;  %v1117_v13 = vsub.f32 %v2196_v19, %v2407_v9 }
 0x280   : > { %v1174_v59 = vmul.f32 1.442695, %v1110_v47  ;;  %v1176_v37 = vmul.f32 1.442695, %v1111_v57  ;;  %v1178_v6 = vmul.f32 1.442695, %v1112_v51  ;;  %v1118_v16 = vsub.f32 %v2208_v22, %v2404_v7 }
 0x281   : > { %v1180_v8 = vmul.f32 1.442695, %v1113_v63  ;;  %v1182_v15 = vmul.f32 1.442695, %v1114_v61  ;;  %v1119_v18 = vsub.f32 %v2204_v21, %v2407_v9  ;;  %v1184_v26 = vmul.f32 1.442695, %v1115_v62 }
 0x282   : > { %1834 = vpow2.f32 %v1174_v59  ;;  %v1120_v17 = vsub.f32 %v2214_v24, %v2404_v7  ;;  %v1186_v20 = vmul.f32 1.442695, %v1116_v14  ;;  %v1140_v56 = vsub.f32 %v2282_v58, %v2404_v7 }
 0x283   : > { %1836 = vpow2.f32 %v1176_v37  ;;  %v1188_v19 = vmul.f32 1.442695, %v1117_v13  ;;  %v1121_v22 = vsub.f32 %v2210_v23, %v2407_v9  ;;  %v1190_v2 = vmul.f32 1.442695, %v1118_v16 }
 0x284   : > { %1838 = vpow2.f32 %v1178_v6  ;;  %v1138_v21 = vsub.f32 %v2274_v54, %v2404_v7  ;;  %v1192_v10 = vmul.f32 1.442695, %v1119_v18  ;;  %v1122_v24 = vsub.f32 %v2220_v27, %v2404_v7 }
 0x285   : > { %1840 = vpow2.f32 %v1180_v8  ;;  %v1194_v57 = vmul.f32 1.442695, %v1120_v17  ;;  %v1136_v51 = vsub.f32 %v2266_v50, %v2404_v7  ;;  %v1234_v23 = vmul.f32 1.442695, %v1140_v56 }
 0x286   : > { %1842 = vpow2.f32 %v1182_v15  ;;  %v1124_v54 = vsub.f32 %v2224_v29, %v2404_v7  ;;  %v1196_v61 = vmul.f32 1.442695, %v1121_v22  ;;  %v1134_v27 = vsub.f32 %v2258_v46, %v2404_v7 }
 0x287   : > { %1844 = vpow2.f32 %v1184_v26  ;;  %v1230_v62 = vmul.f32 1.442695, %v1138_v21  ;;  %v1126_v50 = vsub.f32 %v2230_v32, %v2404_v7  ;;  %v1198_v14 = vmul.f32 1.442695, %v1122_v24  ;;  %v2826_v24 = vld [vmem:[#allocation8_spill] sm:$0xff] }
 0x288   : > { %v2437_v47 = vpop.eup %1834  ;;  %1846 = vpow2.f32 %v1186_v20  ;;  %v1132_v29 = vsub.f32 %v2252_v43, %v2404_v7  ;;  %v1226_v13 = vmul.f32 1.442695, %v1136_v51  ;;  %v1128_v46 = vsub.f32 %v2238_v36, %v2404_v7 }
 0x289   : > { %v2441_v58 = vpop.eup %1836  ;;  %1848 = vpow2.f32 %v1188_v19  ;;  %v1202_v16 = vmul.f32 1.442695, %v1124_v54  ;;  %v1130_v18 = vsub.f32 %v2246_v40, %v2404_v7  ;;  %v1222_v26 = vmul.f32 1.442695, %v1134_v27 }
 0x28a   : > { %v2445_v63 = vpop.eup %1838  ;;  %1850 = vpow2.f32 %v1190_v2  ;;  %v1123_v17 = vsub.f32 %v2216_v25, %v2407_v9  ;;  %v1206_v20 = vmul.f32 1.442695, %v1126_v50  ;;  %v1125_v19 = vsub.f32 %v2222_v28, %v2407_v9  ;;  %v2827_v28 = vld [vmem:[#allocation10_spill] sm:$0xff] }
 0x28b   : > { %v2449_v59 = vpop.eup %1840  ;;  %1852 = vpow2.f32 %v1192_v10  ;;  %v1304_v15 = vadd.f32 %v2445_v63, %v2437_v47  ;;  %v1218_v22 = vmul.f32 1.442695, %v1132_v29  ;;  %v1127_v40 = vsub.f32 %v2228_v31, %v2407_v9 }
 0x28c   : > { %v2453_v37 = vpop.eup %1842  ;;  %1854 = vpow2.f32 %v1194_v57  ;;  %v1210_v21 = vmul.f32 1.442695, %v1128_v46  ;;  %v1129_v57 = vsub.f32 %v2826_v24, %v2407_v9  ;;  %v1214_v51 = vmul.f32 1.442695, %v1130_v18 }
 0x28d   : > { %v2457_v6 = vpop.eup %1844  ;;  %1856 = vpow2.f32 %v1234_v23  ;;  %v1305_v36 = vadd.f32 %v2453_v37, %v1304_v15  ;;  %v1131_v54 = vsub.f32 %v2827_v28, %v2407_v9  ;;  %v1204_v50 = vmul.f32 1.442695, %v1125_v19 }
 0x28e   : > { %v2461_v8 = vpop.eup %1846  ;;  %1858 = vpow2.f32 %v1196_v61  ;;  %v1200_v61 = vmul.f32 1.442695, %v1123_v17 }
 0x28f   : > { %v2467_v32 = vpop.eup %1848  ;;  %1860 = vpow2.f32 %v1230_v62  ;;  %v1306_v25 = vadd.f32 %v2461_v8, %v1305_v36  ;;  %v1133_v62 = vsub.f32 %v2248_v41, %v2407_v9  ;;  %v1137_v41 = vsub.f32 %v2262_v48, %v2407_v9  ;;  %v2829_v36 = vld [vmem:[#allocation15_spill] sm:$0xff] }
 0x290   : > { %v2471_v43 = vpop.eup %1850  ;;  %1862 = vpow2.f32 %v1198_v14  ;;  %v1341_v14 = vadd.f32 %v2449_v59, %v2441_v58  ;;  %v1139_v19 = vsub.f32 %v2829_v36, %v2407_v9  ;;  %v1141_v48 = vsub.f32 %v2276_v55, %v2407_v9 }
 0x291   : > { %v2476_v56 = vpop.eup %1852  ;;  %1864 = vpow2.f32 %v1226_v13  ;;  %v1307_v31 = vadd.f32 %v2471_v43, %v1306_v25  ;;  %v2828_v13 = vld [vmem:[#allocation13_spill] sm:$0xff]  ;;  %v1220_v25 = vmul.f32 1.442695, %v1133_v62  ;;  %v1228_v55 = vmul.f32 1.442695, %v1137_v41 }
 0x292   : > { %v2480_v2 = vpop.eup %1854  ;;  %1866 = vpow2.f32 %v1202_v16  ;;  %v1135_v46 = vsub.f32 %v2828_v13, %v2407_v9  ;;  %v1208_v16 = vmul.f32 1.442695, %v1127_v40  ;;  %v1342_v17 = vadd.f32 %v2457_v6, %v1341_v14 }
 0x293   : > { %v2485_v10 = vpop.eup %1856  ;;  %1868 = vpow2.f32 %v1222_v26  ;;  %v1308_v15 = vadd.f32 %v2480_v2, %v1307_v31  ;;  %v1212_v26 = vmul.f32 1.442695, %v1129_v57  ;;  %v2830_v31 = vld [vmem:[#allocation19_spill] sm:$0xff]  ;;  %v1144_v13 = vsub.f32 %v2308_v11, %v2404_v7 }
 0x294   : > { %v2489_v23 = vpop.eup %1858  ;;  %1870 = vpow2.f32 %v1206_v20  ;;  %1402 = vmatpush.msrb.mxu2 %v2485_v10  ;;  %v1343_v24 = vadd.f32 %v2467_v32, %v1342_v17  ;;  %v1224_v28 = vmul.f32 1.442695, %v1135_v46  ;;  %v1143_v14 = vsub.f32 %v2830_v31, %v2407_v9  ;;  %v2832_v31 = vld [vmem:[#allocation23_spill] sm:$0xff] }
 0x295   : > { %v2495_v27 = vpop.eup %1860  ;;  %1872 = vpow2.f32 %v1218_v22  ;;  %v1216_v22 = vmul.f32 1.442695, %v1131_v54  ;;  %v1236_v17 = vmul.f32 1.442695, %v1141_v48  ;;  %v1146_v41 = vsub.f32 %v2329_v33, %v2404_v7 }
 0x296   : > { %v2501_v29 = vpop.eup %1862  ;;  %1874 = vpow2.f32 %v1210_v21  ;;  %1403 = vmatpush.msrb.mxu2 %v2495_v27  ;;  %v1344_v62 = vadd.f32 %v2476_v56, %v1343_v24  ;;  %v1242_v33 = vmul.f32 1.442695, %v1144_v13 }
 0x297   : > { %v2507_v18 = vpop.eup %1864  ;;  %1876 = vpow2.f32 %v1214_v51  ;;  %v1309_v40 = vadd.f32 %v2501_v29, %v1308_v15  ;;  %v1142_v51 = vsub.f32 %v2292_v0, %v2404_v7  ;;  %v1232_v0 = vmul.f32 1.442695, %v1139_v19 }
 0x298   : > { %v2512_v20 = vpop.eup %1866  ;;  %1878 = vpow2.f32 %v1200_v61  ;;  %1404 = vmatpush.msrb.mxu2 %v2507_v18  ;;  %v1145_v15 = vsub.f32 %v2297_v3, %v2407_v9  ;;  %v1345_v36 = vadd.f32 %v2489_v23, %v1344_v62  ;;  %v1240_v3 = vmul.f32 1.442695, %v1143_v14 }
 0x299   : > { %v2518_v21 = vpop.eup %1868  ;;  %1880 = vpow2.f32 %v1204_v50  ;;  %v1310_v54 = vadd.f32 %v2512_v20, %v1309_v40  ;;  %v1238_v40 = vmul.f32 1.442695, %v1142_v51  ;;  %v1149_v62 = vsub.f32 %v2832_v31, %v2407_v9 }
 0x29a   : > { %v1871_v57 = vpop.eup %1870  ;;  %1882 = vpow2.f32 %v1208_v16  ;;  %1405 = vmatpush.msrb.mxu2 %v2518_v21 }
 0x29b   : > { %v1873_v61 = vpop.eup %1872  ;;  %1884 = vpow2.f32 %v1212_v26  ;;  %v1311_v16 = vadd.f32 %v1871_v57, %v1310_v54  ;;  %v1148_v54 = vsub.f32 %v2359_v42, %v2404_v7  ;;  %v1246_v42 = vmul.f32 1.442695, %v1146_v41 }
 0x29c   : > { %v1875_v50 = vpop.eup %1874  ;;  %1886 = vpow2.f32 %v1216_v22  ;;  %1406 = vmatpush.msrb.mxu2 %v1873_v61  ;;  %v2831_v22 = vld [vmem:[#allocation22_spill] sm:$0xff] }
 0x29d   : > { %v1877_v46 = vpop.eup %1876  ;;  %1888 = vpow2.f32 %v1220_v25  ;;  %v1312_v11 = vadd.f32 %v1875_v50, %v1311_v16  ;;  %v1147_v24 = vsub.f32 %v2831_v22, %v2407_v9  ;;  %v1244_v16 = vmul.f32 1.442695, %v1145_v15 }
 0x29e   : > { %v2535_v26 = vpop.eup %1878  ;;  %1890 = vpow2.f32 %v1224_v28  ;;  %1407 = vmatpush.msrb.mxu2 %v1877_v46  ;;  %v1152_v22 = vsub.f32 %v2236_v35, %v2404_v7 }
 0x29f   : > { %v2539_v19 = vpop.eup %1880  ;;  %1892 = vpow2.f32 %v1228_v55  ;;  %v1346_v48 = vadd.f32 %v2535_v26, %v1345_v36  ;;  %v1313_v28 = vadd.f32 %v1877_v46, %v1312_v11  ;;  %v1150_v36 = vsub.f32 %v2379_v45, %v2404_v7 }
 0x2a0   : > { %v2544_v25 = vpop.eup %1882  ;;  %1894 = vpow2.f32 %v1232_v0  ;;  %1408 = vmatpush.msrb.mxu2 %v1875_v50  ;;  %v2833_v50 = vld [vmem:[#allocation6_spill] sm:$0xff]  ;;  %v1248_v11 = vmul.f32 1.442695, %v1147_v24  ;;  %v1250_v45 = vmul.f32 1.442695, %v1148_v54 }
 0x2a1   : > { %v2548_v51 = vpop.eup %1884  ;;  %1896 = vpow2.f32 %v1236_v17  ;;  %v1347_v14 = vadd.f32 %v2539_v19, %v1346_v48  ;;  %v1314_v0 = vadd.f32 %v1873_v61, %v1313_v28  ;;  %v1151_v46 = vsub.f32 %v2833_v50, %v2407_v9  ;;  %v2834_v48 = vld [vmem:[#allocation7_spill] sm:$0xff] }
 0x2a2   : > { %v2553_v55 = vpop.eup %1886  ;;  %1898 = vpow2.f32 %v1238_v40  ;;  %1409 = vmatpush.msrb.mxu2 %v1871_v57  ;;  %v1172_v61 = vsub.f32 %v2387_v60, %v2404_v7  ;;  %v1252_v40 = vmul.f32 1.442695, %v1149_v62  ;;  %v1153_v35 = vsub.f32 %v2834_v48, %v2407_v9 }
 0x2a3   : > { %v2557_v13 = vpop.eup %1888  ;;  %1900 = vpow2.f32 %v1240_v3  ;;  %v1348_v15 = vadd.f32 %v2544_v25, %v1347_v14  ;;  %v1315_v41 = vadd.f32 %v2518_v21, %v1314_v0  ;;  %v1254_v54 = vmul.f32 1.442695, %v1150_v36 }
 0x2a4   : > { %v2562_v17 = vpop.eup %1890  ;;  %1902 = vpow2.f32 %v1242_v33  ;;  %1410 = vmatpush.msrb.mxu2 %v2512_v20  ;;  %v1170_v60 = vsub.f32 %v2373_v52, %v2404_v7  ;;  %v1256_v33 = vmul.f32 1.442695, %v1151_v46  ;;  %v1154_v62 = vsub.f32 %v2244_v39, %v2404_v7 }
 0x2a5   : > { %v2568_v57 = vpop.eup %1892  ;;  %1904 = vpow2.f32 %v1244_v16  ;;  %v1349_v24 = vadd.f32 %v2548_v51, %v1348_v15  ;;  %v1316_v21 = vadd.f32 %v2507_v18, %v1315_v41  ;;  %v1258_v16 = vmul.f32 1.442695, %v1152_v22 }
 0x2a6   : > { %v2573_v3 = vpop.eup %1894  ;;  %1906 = vpow2.f32 %v1246_v42  ;;  %1411 = vmatpush.msrb.mxu2 %v2501_v29  ;;  %v1168_v52 = vsub.f32 %v2350_v34, %v2404_v7  ;;  %v1298_v14 = vmul.f32 1.442695, %v1172_v61  ;;  %v1156_v39 = vsub.f32 %v2254_v44, %v2404_v7 }
 0x2a7   : > { %v2579_v20 = vpop.eup %1896  ;;  %1908 = vpow2.f32 %v1248_v11  ;;  %v1350_v28 = vadd.f32 %v2553_v55, %v1349_v24  ;;  %v1317_v18 = vadd.f32 %v2495_v27, %v1316_v21  ;;  %v1260_v0 = vmul.f32 1.442695, %v1153_v35 }
 0x2a8   : > { %v2584_v31 = vpop.eup %1898  ;;  %1910 = vpow2.f32 %v1250_v45  ;;  %1412 = vmatpush.msrb.mxu2 %v2480_v2  ;;  %v1166_v34 = vsub.f32 %v2317_v4, %v2404_v7  ;;  %v1294_v50 = vmul.f32 1.442695, %v1170_v60  ;;  %v1158_v44 = vsub.f32 %v2264_v49, %v2404_v7 }
 0x2a9   : > { %v2590_v29 = vpop.eup %1900  ;;  %1912 = vpow2.f32 %v1252_v40  ;;  %v1351_v36 = vadd.f32 %v2557_v13, %v1350_v28  ;;  %v1318_v27 = vadd.f32 %v2485_v10, %v1317_v18  ;;  %v1262_v15 = vmul.f32 1.442695, %v1154_v62 }
 0x2aa   : > { %v2595_v42 = vpop.eup %1902  ;;  %1914 = vpow2.f32 %v1254_v54  ;;  %1413 = vmatpush.msrb.mxu2 %v2471_v43  ;;  %v1164_v4 = vsub.f32 %v2294_v1, %v2404_v7  ;;  %v1290_v22 = vmul.f32 1.442695, %v1168_v52  ;;  %v1160_v49 = vsub.f32 %v2272_v53, %v2404_v7  ;;  %v2835_v1 = vld [vmem:[#allocation18_spill] sm:$0xff]  ;;  %v2836_v53 = vld [vmem:[#allocation9_spill] sm:$0xff] }
 0x2ab   : > { %v2601_v2 = vpop.eup %1904  ;;  %1916 = vpow2.f32 %v1256_v33  ;;  %v1352_v46 = vadd.f32 %v2562_v17, %v1351_v36  ;;  %v1319_v10 = vadd.f32 %v2584_v31, %v1318_v27  ;;  %v1266_v61 = vmul.f32 1.442695, %v1156_v39 }
 0x2ac   : > { %v2606_v11 = vpop.eup %1906  ;;  %1918 = vpow2.f32 %v1258_v16  ;;  %1414 = vmatpush.msrb.mxu2 %v2461_v8  ;;  %v1162_v24 = vsub.f32 %v2835_v1, %v2404_v7  ;;  %v1286_v48 = vmul.f32 1.442695, %v1166_v34  ;;  %v1270_v21 = vmul.f32 1.442695, %v1158_v44  ;;  %v2837_v16 = vld [vmem:[#allocation11_spill] sm:$0xff]  ;;  %v2838_v34 = vld [vmem:[#allocation12_spill] sm:$0xff] }
 0x2ad   : > { %v2612_v43 = vpop.eup %1908  ;;  %1920 = vpow2.f32 %v1298_v14  ;;  %v1353_v45 = vadd.f32 %v2568_v57, %v1352_v46  ;;  %v1320_v40 = vadd.f32 %v2595_v42, %v1319_v10  ;;  %v1282_v33 = vmul.f32 1.442695, %v1164_v4  ;;  %v2839_v10 = vld [vmem:[#allocation14_spill] sm:$0xff] }
 0x2ae   : > { %v2617_v41 = vpop.eup %1910  ;;  %1922 = vpow2.f32 %v1260_v0  ;;  %1415 = vmatpush.msrb.mxu2 %v2453_v37  ;;  %v1155_v37 = vsub.f32 %v2836_v53, %v2407_v9  ;;  %v1157_v18 = vsub.f32 %v2837_v16, %v2407_v9  ;;  %v1274_v52 = vmul.f32 1.442695, %v1160_v49  ;;  %v2654_v0 = vld [vmem:[%s2635_s26] sm:$0xff] }
 0x2af   : > { %v2623_v8 = vpop.eup %1912  ;;  %1924 = vpow2.f32 %v1294_v50  ;;  %v1354_v35 = vadd.f32 %v2573_v3, %v1353_v45  ;;  %v1321_v60 = vadd.f32 %v2606_v11, %v1320_v40  ;;  %v1159_v50 = vsub.f32 %v2838_v34, %v2407_v9 }
 0x2b0   : > { %v2628_v54 = vpop.eup %1914  ;;  %1926 = vpow2.f32 %v1262_v15  ;;  %1416 = vmatpush.msrb.mxu2 %v2445_v63  ;;  %v1278_v63 = vmul.f32 1.442695, %v1162_v24  ;;  %v1264_v46 = vmul.f32 1.442695, %v1155_v37  ;;  %v1161_v4 = vsub.f32 %v2839_v10, %v2407_v9 }
 0x2b1   : > { %v2641_v7 = vpop.eup %1916  ;;  %1928 = vpow2.f32 %v1290_v22  ;;  %v1355_v28 = vadd.f32 %v2579_v20, %v1354_v35  ;;  %v1322_v14 = vadd.f32 %v2617_v41, %v1321_v60  ;;  %v1268_v22 = vmul.f32 1.442695, %v1157_v18  ;;  %v2688_v18 = vld [vmem:[%s2635_s26 + $0x10] sm:$0xff] }
 0x2b2   : > { %v2644_v62 = vpop.eup %1918  ;;  %1930 = vpow2.f32 %v1266_v61  ;;  %1417 = vmatpush.msrb.mxu2 %v2437_v47  ;;  %v1272_v24 = vmul.f32 1.442695, %v1159_v50  ;;  %v1276_v60 = vmul.f32 1.442695, %v1161_v4 }
 0x2b3   : > { %v2650_v36 = vpop.eup %1920  ;;  %1932 = vpow2.f32 %v1286_v48  ;;  %v1356_v39 = vadd.f32 %v2590_v29, %v1355_v28  ;;  %v1323_v44 = vadd.f32 %v2628_v54, %v1322_v14  ;;  %1418 = vmatmul.f32.vlgmr.msrb.gmra.mxu2 %v2654_v0  ;;  %v2842_v14 = vld [vmem:[#allocation20_spill] sm:$0xff] }
 0x2b4   : > { %1448 = vmatpush.msra.mxu2 %v2579_v20  ;;  %v2657_v27 = vpop.eup %1922  ;;  %1934 = vpow2.f32 %v1270_v21  ;;  %1425 = vmatpush.msra.mxu3 %v2650_v36  ;;  %v2841_v21 = vld [vmem:[#allocation17_spill] sm:$0xff] }
 0x2b5   : > { %v2664_v47 = vpop.eup %1924  ;;  %1936 = vpow2.f32 %v1282_v33  ;;  %v1357_v15 = vadd.f32 %v2601_v2, %v1356_v39  ;;  %v1324_v45 = vadd.f32 %v2644_v62, %v1323_v44  ;;  %v2843_v44 = vld [vmem:[#allocation21_spill] sm:$0xff] }
 0x2b6   : > { %1449 = vmatpush.msra.mxu2 %v2573_v3  ;;  %v2668_v20 = vpop.eup %1926  ;;  %1938 = vpow2.f32 %v1274_v52  ;;  %1426 = vmatpush.msra.mxu3 %v2664_v47  ;;  %v2840_v3 = vld [vmem:[#allocation16_spill] sm:$0xff] }
 0x2b7   : > { %v2674_v49 = vpop.eup %1928  ;;  %1940 = vpow2.f32 %v1278_v63  ;;  %v1358_v61 = vadd.f32 %v2612_v43, %v1357_v15  ;;  %v1163_v1 = vsub.f32 %v2840_v3, %v2407_v9  ;;  %v1325_v48 = vadd.f32 %v2668_v20, %v1324_v45  ;;  %v2844_v45 = vld [vmem:[#allocation24_spill] sm:$0xff] }
 0x2b8   : > { %1450 = vmatpush.msra.mxu2 %v2568_v57  ;;  %v1931_v40 = vpop.eup %1930  ;;  %1942 = vpow2.f32 %v1264_v46  ;;  %1427 = vmatpush.msra.mxu3 %v2674_v49  ;;  %v1165_v57 = vsub.f32 %v2841_v21, %v2407_v9  ;;  %v1167_v63 = vsub.f32 %v2842_v14, %v2407_v9 }
 0x2b9   : > { %v1933_v35 = vpop.eup %1932  ;;  %v1359_v53 = vadd.f32 %v2623_v8, %v1358_v61  ;;  %1944 = vpow2.f32 %v1268_v22  ;;  %v1326_v33 = vadd.f32 %v1931_v40, %v1325_v48  ;;  %v1171_v61 = vsub.f32 %v2844_v45, %v2407_v9  ;;  %v2845_v48 = vld [vmem:[#allocation25_spill] sm:$0xff] }
 0x2ba   : > { %1451 = vmatpush.msra.mxu2 %v2562_v17  ;;  %v1935_v37 = vpop.eup %1934  ;;  %1428 = vmatpush.msra.mxu3 %v1933_v35  ;;  %1946 = vpow2.f32 %v1272_v24  ;;  %v1280_v17 = vmul.f32 1.442695, %v1163_v1  ;;  %v1284_v15 = vmul.f32 1.442695, %v1165_v57 }
 0x2bb   : > { %v1937_v28 = vpop.eup %1936  ;;  %v1360_v16 = vadd.f32 %v2641_v7, %v1359_v53  ;;  %v1327_v39 = vadd.f32 %v1935_v37, %v1326_v33  ;;  %1421 = vmatmul.f32.gmra.mxu2 %v2688_v18  ;;  %1948 = vpow2.f32 %v1276_v60  ;;  %v1173_v53 = vsub.f32 %v2845_v48, %v2407_v9 }
 0x2bc   : > { %1452 = vmatpush.msra.mxu2 %v2557_v13  ;;  %v1939_v52 = vpop.eup %1938  ;;  %1429 = vmatpush.msra.mxu3 %v1937_v28  ;;  %v1169_v13 = vsub.f32 %v2843_v44, %v2407_v9  ;;  %1950 = vpow2.f32 %v1280_v17  ;;  %v1296_v33 = vmul.f32 1.442695, %v1171_v61 }
 0x2bd   : > { %v1941_v34 = vpop.eup %1940  ;;  %v1361_v50 = vadd.f32 %v2657_v27, %v1360_v16  ;;  %v1328_v10 = vadd.f32 %v1939_v52, %v1327_v39  ;;  %1952 = vpow2.f32 %v1284_v15  ;;  %v1300_v9 = vmul.f32 1.442695, %v1173_v53  ;;  %v632_v39 = vld [vmem:[%s2635_s26 + $0x18] sm:$0xff] }
 0x2be   : > { %1453 = vmatpush.msra.mxu2 %v2553_v55  ;;  %v2696_v46 = vpop.eup %1942  ;;  %1430 = vmatpush.msra.mxu3 %v1941_v34  ;;  %v1288_v55 = vmul.f32 1.442695, %v1167_v63 }
 0x2bf   : > { %v1362_v4 = vadd.f32 %v2696_v46, %v1361_v50  ;;  %v2702_v22 = vpop.eup %1944  ;;  %v1329_v3 = vadd.f32 %v1941_v34, %v1328_v10 }
 0x2c0   : > { %1454 = vmatpush.msra.mxu2 %v2548_v51  ;;  %1431 = vmatpush.msra.mxu3 %v1939_v52  ;;  %v2708_v24 = vpop.eup %1946  ;;  %v1292_v51 = vmul.f32 1.442695, %v1169_v13  ;;  %1954 = vpow2.f32 %v1288_v55 }
 0x2c1   : > { %v1363_v1 = vadd.f32 %v2702_v22, %v1362_v4  ;;  %v1330_v21 = vadd.f32 %v1937_v28, %v1329_v3  ;;  %v2714_v60 = vpop.eup %1948 }
 0x2c2   : > { %1455 = vmatpush.msra.mxu2 %v2544_v25  ;;  %1432 = vmatpush.msra.mxu3 %v1935_v37  ;;  %v1951_v52 = vpop.eup %1950  ;;  %1956 = vpow2.f32 %v1292_v51 }
 0x2c3   : > { %v1364_v57 = vadd.f32 %v2708_v24, %v1363_v1  ;;  %v1331_v16 = vadd.f32 %v1933_v35, %v1330_v21  ;;  %1958 = vpow2.f32 %v1296_v33 }
 0x2c4   : > { %1456 = vmatpush.msra.mxu2 %v2539_v19  ;;  %1433 = vmatpush.msra.mxu3 %v1931_v40  ;;  %v1953_v19 = vpop.eup %1952  ;;  %1960 = vpow2.f32 %v1300_v9 }
 0x2c5   : > { %v1365_v25 = vadd.f32 %v2714_v60, %v1364_v57  ;;  %v1332_v28 = vadd.f32 %v2674_v49, %v1331_v16 }
 0x2c6   : > { %1457 = vmatpush.msra.mxu2 %v2535_v26  ;;  %1434 = vmatpush.msra.mxu3 %v2668_v20  ;;  %v1955_v26 = vpop.eup %1954 }
 0x2c7   : > { %v1366_v37 = vadd.f32 %v1951_v52, %v1365_v25  ;;  %v1333_v14 = vadd.f32 %v2664_v47, %v1332_v28 }
 0x2c8   : > { %1458 = vmatpush.msra.mxu2 %v2489_v23  ;;  %1435 = vmatpush.msra.mxu3 %v2644_v62  ;;  %v1957_v23 = vpop.eup %1956 }
 0x2c9   : > { %v1367_v40 = vadd.f32 %v1953_v19, %v1366_v37  ;;  %v1334_v35 = vadd.f32 %v2650_v36, %v1333_v14  ;;  %v1959_v62 = vpop.eup %1958  ;;  %v1526_v37 = vpop.permute.xlu1 %1525 }
 0x2ca   : > { %1459 = vmatpush.msra.mxu2 %v2476_v56  ;;  %1436 = vmatpush.msra.mxu3 %v2628_v54  ;;  %v1961_v36 = vpop.eup %1960  ;;  %v630_v54 = vld [vmem:[%s2635_s26 + $0x8] sm:$0xff] }
 0x2cb   : > { %v1368_v20 = vadd.f32 %v1955_v26, %v1367_v40  ;;  %v1335_v49 = vrot.slane %v1334_v35, 4 }
 0x2cc   : > { %1460 = vmatpush.msra.mxu2 %v2467_v32  ;;  %1437 = vmatpush.msra.mxu3 %v2617_v41 }
 0x2cd   : > { %v1369_v47 = vadd.f32 %v1957_v23, %v1368_v20  ;;  %v1336_v56 = vadd.f32 %v1335_v49, %v1334_v35 }
 0x2ce   : > { %1461 = vmatpush.msra.mxu2 %v2457_v6  ;;  %1438 = vmatpush.msra.mxu3 %v2606_v11  ;;  %v1103_v6 = vmul.f32 1.442695, %v1102_v12 }
 0x2cf   : > { %v1370_v63 = vadd.f32 %v1959_v62, %v1369_v47  ;;  %v1337_v11 = vrot.slane %v1336_v56, 2 }
 0x2d0   : > { %1462 = vmatpush.msra.mxu2 %v2449_v59  ;;  %1439 = vmatpush.msra.mxu3 %v2595_v42  ;;  %1962 = vpow2.f32 %v1103_v6 }
 0x2d1   : > { %v1371_v32 = vadd.f32 %v1961_v36, %v1370_v63  ;;  %v1338_v42 = vadd.f32 %v1337_v11, %v1336_v56 }
 0x2d2   : > { %1463 = vmatpush.msra.mxu2 %v2441_v58  ;;  %1440 = vmatpush.msra.mxu3 %v2584_v31 }
 0x2d3   : > { %1464 = vmatmul.f32.vlgmr.msra.gmra.mxu2 %v2654_v0  ;;  %v1372_v41 = vrot.slane %v1371_v32, 4  ;;  %1441 = vmatmul.f32.vlgmr.msra.gmra.mxu3 %v630_v54  ;;  %v1339_v31 = vrot.slane %v1338_v42, 1 }
 0x2d4   : > { %1471 = vmatpush.msrb.mxu3 %v1961_v36 }
 0x2d5   : > { %v1373_v59 = vadd.f32 %v1372_v41, %v1371_v32  ;;  %v1340_v34 = vadd.f32 %v1339_v31, %v1338_v42 }
 0x2d6   : > { %1472 = vmatpush.msrb.mxu3 %v1959_v62  ;;  %v1963_v38 = vpop.eup %1962 }
 0x2d7   : > { %v1374_v17 = vrot.slane %v1373_v59, 2  ;;  %v1303_v44 = vmul.f32 %v1963_v38, %v1302_v30  ;;  %v1394_v4 = vperm.slane %v1963_v38, 0  ;;  %v1395_v48 = vperm.slane %v1963_v38, 1 }
 0x2d8   : > { %1473 = vmatpush.msrb.mxu3 %v1957_v23 }
 0x2d9   : > { %v1375_v58 = vadd.f32 %v1374_v17, %v1373_v59  ;;  %v1399_v57 = vmul.f32 0.0, %v1395_v48 }
 0x2da   : > { %1474 = vmatpush.msrb.mxu3 %v1955_v26 }
 0x2db   : > { %1467 = vmatmul.f32.gmra.mxu2 %v2688_v18  ;;  %v1376_v0 = vrot.slane %v1375_v58, 1  ;;  %1444 = vmatmul.f32.gmra.mxu3 %v632_v39 }
 0x2dc   : > { %1475 = vmatpush.msrb.mxu3 %v1953_v19 }
 0x2dd   : > { %v1377_v12 = vadd.f32 %v1376_v0, %v1375_v58 }
 0x2de   : > { %1476 = vmatpush.msrb.mxu3 %v1951_v52 }
 0x2df   : > { %v1380_v50 = vrot.slane %v1377_v12, 7 }
 0x2e0   : > { %1477 = vmatpush.msrb.mxu3 %v2714_v60 }
 0x2e1   : > { %v1381_v13 = vsel %vm1098_vm4, %v1340_v34, %v1380_v50 }
 0x2e2   : > { %v1383_v15 = vadd.f32 %v1381_v13, %v1303_v44  ;;  %1478 = vmatpush.msrb.mxu3 %v2708_v24 }
 0x2e4   : > { %1388 = vst.msk [vmem:[#allocation4] sm:$0x3] %vm2334_vm3, %v1383_v15  ;;  %1479 = vmatpush.msrb.mxu3 %v2702_v22 }
 0x2e6   : > { %1480 = vmatpush.msrb.mxu3 %v2696_v46 }
 0x2e8   : > { %1481 = vmatpush.msrb.mxu3 %v2657_v27 }
 0x2ea   : > { %1482 = vmatpush.msrb.mxu3 %v2641_v7  ;;  %v1398_v7 = vmul.f32 0.0, %v1394_v4 }
 0x2eb   : > { %v1510_v18 = vld [vmem:[#allocation4] sm:$0x3] }
 0x2ec   : > { %1483 = vmatpush.msrb.mxu3 %v2623_v8  ;;  %1964 = vrcp.f32 %v1510_v18 }
 0x2ee   : > { %1484 = vmatpush.msrb.mxu3 %v2612_v43 }
 0x2f0   : > { %1485 = vmatpush.msrb.mxu3 %v2601_v2 }
 0x2f2   : > { %1486 = vmatpush.msrb.mxu3 %v2590_v29  ;;  %v1965_v27 = vpop.eup %1964  ;;  %v1521_v29 = vld [vmem:[%s2781_s7] sm:$0xf] }
 0x2f3   : > { %1487 = vmatmul.f32.vlgmr.msrb.gmra.mxu3 %v630_v54  ;;  %v1513_v43 = vperm.slane %v1965_v27, 0  ;;  %v1514_v25 = vperm.slane %v1965_v27, 1 }
 0x2fb   : > { %1490 = vmatmul.f32.gmra.mxu3 %v632_v39 }
 0x336   : > { %v1419_v5 = vpop.f32.mrf.mxu2 }
 0x33e   : > { %v1422_v46 = vpop.f32.mrf.mxu2 }
 0x356   : > { %v1442_v10 = vpop.f32.mrf.mxu3  ;;  %v1465_v1 = vpop.f32.mrf.mxu2 }
 0x357   : > { %v1443_v22 = vadd.f32 %v1442_v10, %v1419_v5 }
 0x359   : > { %v1494_v8 = vadd.f32 %v1443_v22, %v1398_v7 }
 0x35b   : > { %v1517_v2 = vmul.f32 %v1513_v43, %v1494_v8 }
 0x35e   : > { %v1445_v45 = vpop.f32.mrf.mxu3  ;;  %v1468_v53 = vpop.f32.mrf.mxu2 }
 0x35f   : > { %v1446_v61 = vadd.f32 %v1445_v45, %v1422_v46 }
 0x361   : > { %v1496_v55 = vadd.f32 %v1446_v61, %v1398_v7 }
 0x363   : > { %v1519_v3 = vmul.f32 %v1513_v43, %v1496_v55 }
 0x365   : > { %1545 = vmatpush.msrb.mxu2 %v1519_v3 }
 0x367   : > { %1546 = vmatpush.msrb.mxu2 %v1517_v2 }
 0x368   : > { %1793 = vmatmul.msk.f32.vlgmr.msrb.gmra.mxu2 %vm550_vm2, %v1521_v29 }
 0x376   : > { %v1488_v24 = vpop.f32.mrf.mxu3 }
 0x377   : > { %v1489_v51 = vadd.f32 %v1488_v24, %v1465_v1 }
 0x379   : > { %v1495_v33 = vadd.f32 %v1489_v51, %v1399_v57 }
 0x37b   : > { %v1518_v9 = vmul.f32 %v1514_v25, %v1495_v33 }
 0x37e   : > { %v1491_v21 = vpop.f32.mrf.mxu3 }
 0x37f   : > { %v1492_v60 = vadd.f32 %v1491_v21, %v1468_v53 }
 0x381   : > { %v1497_v16 = vadd.f32 %v1492_v60, %v1399_v57 }
 0x383   : > { %v1520_v52 = vmul.f32 %v1514_v25, %v1497_v16 }
 0x385   : > { %1565 = vmatpush.msra.mxu3 %v1520_v52 }
 0x387   : > { %1566 = vmatpush.msra.mxu3 %v1518_v9 }
 0x388   : > { %1794 = vmatmul.msk.f32.vlgmr.msra.gmra.mxu3 %vm550_vm2, %v1521_v29 }
 0x3eb   : > { %v1548_v28 = vpop.f32.mrf.mxu2 }
 0x3ec   : > { %v1549_v14 = vadd.f32 %v1548_v28, %v1526_v37 }
 0x3ee   : > { %v1571_v35 = vmax.f32 %v1549_v14, 0.0 }
 0x40b   : > { %v1568_v19 = vpop.f32.mrf.mxu3 }
 0x40c   : > { %v1569_v40 = vadd.f32 %v1568_v19, %v1526_v37 }
 0x40e   : > { %v1572_v26 = vmax.f32 %v1569_v40, 0.0 }
 0x410   : > { %v1575_v20 = vrot.slane %v1572_v26, 4 }
 0x412   : > { %v1577_v23 = vsel %vm481_vm0, %v1571_v35, %v1575_v20 }
 0x413   : > { %1579 = vst [vmem:[%s449_s13] sm:$0xff] %v1577_v23 }
 0x414 PF: > { %s19_s11 = sadd.s32 1, %s1988_s11   ;;  %s2846_s30 = smov %s1984_s10 }
 0x415   : > { %p16_p5 = scmp.ge.s32.totalorder %s19_s11, 4   ;;  %s2847_s10 = smov %s2849_s12 }
 0x417   :  { %18 = sbr.rel (!%p16_p5) target bundleno = 2 (0x2), region = 100 }

// kernel: disparity_level_context.5
= control target key start
LH: loop header
LB: loop body
LE: loop exit
PB: predicated region body
PF: predicated region fallthrough
CT: control target
= control target key end

     0   :  { %s883_s12 = smov 0   ;;  %s885_s13 = smov 0   ;;  %s997_s0 = inlined_call_operand.vmem [shape: f32[2,8,1536], index: 0, kind: input, shape index: {}]   ;;  %s998_s1 = inlined_call_operand.vmem [shape: f32[3,4,72], index: 1, kind: input, shape index: {}]   ;;  %s999_s2 = inlined_call_operand.vmem [shape: f32[4,1], index: 2, kind: input, shape index: {}]   ;;  %s1000_s3 = inlined_call_operand.vmem [shape: f32[2,4,512], index: 3, kind: output, shape index: {}]  }
   0x1   :  { %s887_s14 = smov 0   ;;  %s889_s15 = smov 0  }
   0x2   :  { %s891_s16 = smov 0  }
   0x3 LB: > { %s22_s17 = sadd.s32 1, %s844_s14  ;;  %s25_s18 = sadd.s32 1, %s848_s15  ;;  %s852_s16 = sphi %s891_s16, %s13_s16   ;;  %s848_s15 = sphi %s889_s15, %s1004_s15   ;;  %s844_s14 = sphi %s887_s14, %s1003_s14   ;;  %s840_s13 = sphi %s885_s13, %s1002_s13   ;;  %s836_s12 = sphi %s883_s12, %s1001_s12  }
   0x4   : > { %p23_p0 = scmp.ge.s32.totalorder %s22_s17, 6  ;;  %p610_p1 = scmp.ge.s32.totalorder %s852_s16, 1 }
   0x5   : > { %p164_p2 = scmp.lt.s32.totalorder %s852_s16, 13 }
   0x6   : > { %s1006_s17 = smov (%p23_p0, %s22_s17), 0  ;;  %s1008_s18 = smov (!%p23_p0, %s25_s18), %s848_s15 }
   0x7   : > { %p165_p3 = pnand %p610_p1, %p164_p2  ;;  %p27_p4 = scmp.ge.s32.totalorder %s1008_s18, 2 }
   0x8   : > { %s611_s19 = sshll.u32 (!%p165_p3), %s836_s12, 1  ;;  %p199_p5 = scmp.lt.s32.totalorder (!%p165_p3), %s840_s13, 1 }
   0x9   : > { %s1010_s18 = smov (%p27_p4, %s1008_s18), 0  ;;  %168 = sbr.rel (%p165_p3) target bundleno = 347 (0x15b), region = 32 }
   0xa   : > { %p201_p6 = scmp.lt.s32.totalorder (!%p165_p3), %s611_s19, 11  ;;  %s613_s20 = sadd.s32 (!%p165_p3), 4294967294, %s836_s12 }
   0xb   : > { %p209_p7 = scmp.gt.s32.totalorder (!%p165_p3), %s613_s20, 0  ;;  %p614_p8 = scmp.lt.s32.totalorder (!%p165_p3), %s613_s20, 3 }
   0xc   : > { %s224_s23 = sand.u32 (!%p165_p3), 3, %s836_s12  ;;  %p623_p9 = scmp.lt.s32.totalorder (!%p165_p3), %s836_s12, 2 }
   0xd   : > { %s639_s25 = sshll.u32 (!%p165_p3), %s224_s23, 4 }
   0xe   : > { %s1012_s13 = smov (!%p199_p5, %s840_s13), 1  ;;  %s1014_s19 = smov (!%p201_p6, %s611_s19), 11 }
   0xf   : > { %s643_s21 = smul.u32 12, %s1012_s13  ;;  %s1016_s20 = smov (!%p209_p7, %s613_s20), 0 }
  0x10   : > { %s619_s29 = sshll.u32 %s1012_s13, 2  ;;  %s227_s30 = scalar_lea.vmem [#allocation2], %s639_s25 }
  0x11   : > { %s204_s22 = sadd.s32 %s643_s21, %s1014_s19  ;;  %s1018_s20 = smov (!%p614_p8, %s1016_s20), 3 }
  0x12   : > { %s612_s24 = sshll.u32 %s204_s22, 3  ;;  %s216_s4 = sadd.s32 %s1018_s20, %s619_s29 }
  0x13   : > { %s206_s28 = scalar_lea.vmem %s997_s0, %s612_s24  ;;  %s620_s5 = sshll.u32 %s216_s4, 2 }
  0x14   : > { %v222_v0 = vld [vmem:[%s206_s28] sm:$0xff]  ;;  %v223_v1 = vld [vmem:[%s206_s28 + $0x8] sm:$0xff]  ;;  %s924_s8 = scalar_lea.vmem %s1000_s3, %s620_s5  ;;  %233 = sbr.rel (%p623_p9) target bundleno = 347 (0x15b), region = 36 }
  0x15   : > { %228 = vst [vmem:[%s227_s30] sm:$0xff] %v222_v0  ;;  %s406_s9 = sadd.s32 (!%p623_p9), 4, %s836_s12  ;;  %s234_s11 = sadd.s32 (!%p623_p9), 2, %s836_s12 }
  0x16   : > { %229 = vst [vmem:[%s227_s30 + $0x8] sm:$0xff] %v223_v1  ;;  %s407_s10 = sand.u32 (!%p623_p9), 3, %s406_s9  ;;  %s235_s19 = sand.u32 (!%p623_p9), 3, %s234_s11 }
  0x17   : > { %s642_s13 = sshll.u32 (!%p623_p9), %s407_s10, 4  ;;  %s640_s21 = sshll.u32 (!%p623_p9), %s235_s19, 4 }
  0x18   : > { %s410_s22 = scalar_lea.vmem (!%p623_p9), [#allocation2], %s642_s13  ;;  %s238_s20 = scalar_lea.vmem (!%p623_p9), [#allocation2], %s640_s21 }
  0x19   : > { %s300_s23 = sadd.s32 3, %s836_s12  ;;  %s854_s25 = smov 106   ;;  %vm296_vm0 = vcmask 867328   ;;  %vm289_vm1 = vcmask 875520   ;;  %vm282_vm2 = vcmask 883712   ;;  %vm275_vm3 = vcmask 949248  }
  0x1a   : > { %s301_s24 = sand.u32 3, %s300_s23  ;;  %s855_s27 = smov 108   ;;  %vm268_vm4 = vcmask 957440   ;;  %vm261_vm5 = vcmask 965632   ;;  %vm254_vm6 = vcmask 1031168   ;;  %vm247_vm7 = vcmask 1039360  }
  0x1b   : > { %s641_s26 = sshll.u32 %s301_s24, 4  ;;  %s856_s29 = smov 107   ;;  %vm359_vm8 = vcmask 588800  }
  0x1c   : > { %s304_s28 = scalar_lea.vmem [#allocation2], %s641_s26  ;;  %s857_s12 = smov 116  }
  0x1d   : > { %v929_v2 = vld [vmem:[%s410_s22] sm:$0xff]  ;;  %v412_v3 = vld [vmem:[%s410_s22 + $0x8] sm:$0xff]  ;;  %s858_s30 = smov 117   ;;  %s859_s4 = smov 118  }
  0x1e   : > { %v693_v4 = vpack.i.bf16 %v412_v3, %v929_v2  ;;  %v932_v5 = vld [vmem:[%s238_s20] sm:$0xff]  ;;  %v240_v6 = vld [vmem:[%s238_s20 + $0x8] sm:$0xff]  ;;  %s860_s5 = smov 126   ;;  %s861_s6 = smov 127  }
  0x1f   : > { %v703_v7 = vpack.i.bf16 %v240_v6, %v932_v5  ;;  %v936_v8 = vld [vmem:[%s304_s28] sm:$0xff]  ;;  %v306_v9 = vld [vmem:[%s304_s28 + $0x8] sm:$0xff] }
  0x20   : > { %694 = vrot.lane.b32.xlu0 %v693_v4, %s854_s25  ;;  %714 = vrot.lane.b32.xlu2 %v693_v4, %s855_s27  ;;  %v708_v10 = vpack.i.bf16 %v306_v9, %v936_v8 }
  0x21   : > { %704 = vrot.lane.b32.xlu1 %v703_v7, %s854_s25 }
  0x28   : > { %699 = vrot.lane.b32.xlu0 %v693_v4, %s856_s29  ;;  %719 = vrot.lane.b32.xlu2 %v703_v7, %s856_s29 }
  0x29   : > { %709 = vrot.lane.b32.xlu1 %v708_v10, %s854_s25 }
  0x30   : > { %724 = vrot.lane.b32.xlu0 %v708_v10, %s856_s29  ;;  %734 = vrot.lane.b32.xlu2 %v703_v7, %s855_s27 }
  0x31   : > { %729 = vrot.lane.b32.xlu1 %v693_v4, %s857_s12 }
  0x38   : > { %739 = vrot.lane.b32.xlu0 %v708_v10, %s855_s27  ;;  %749 = vrot.lane.b32.xlu2 %v703_v7, %s857_s12 }
  0x39   : > { %744 = vrot.lane.b32.xlu1 %v693_v4, %s858_s30 }
  0x40   : > { %754 = vrot.lane.b32.xlu0 %v708_v10, %s857_s12  ;;  %764 = vrot.lane.b32.xlu2 %v703_v7, %s858_s30 }
  0x41   : > { %759 = vrot.lane.b32.xlu1 %v693_v4, %s859_s4 }
  0x48   : > { %769 = vrot.lane.b32.xlu0 %v708_v10, %s858_s30  ;;  %779 = vrot.lane.b32.xlu2 %v703_v7, %s859_s4 }
  0x49   : > { %774 = vrot.lane.b32.xlu1 %v693_v4, %s860_s5 }
  0x50   : > { %784 = vrot.lane.b32.xlu0 %v708_v10, %s859_s4  ;;  %794 = vrot.lane.b32.xlu2 %v703_v7, %s860_s5 }
  0x51   : > { %789 = vrot.lane.b32.xlu1 %v693_v4, %s861_s6 }
  0x58   : > { %799 = vrot.lane.b32.xlu0 %v708_v10, %s860_s5  ;;  %809 = vrot.lane.b32.xlu2 %v708_v10, %s861_s6 }
  0x59   : > { %804 = vrot.lane.b32.xlu1 %v703_v7, %s861_s6 }
  0x7a   : > { %v715_v11 = vpop.permute.xlu2 %714 }
  0x7b   : > { %v717_v31 = vunpack.i.h.bf16 %v715_v11  ;;  %v716_v32 = vunpack.i.l.bf16 %v715_v11 }
  0x7d   : > { %v449_v46 = vsel %vm282_vm2, %v716_v32, %v717_v31 }
  0x82   : > { %v720_v12 = vpop.permute.xlu2 %719 }
  0x83   : > { %v722_v15 = vunpack.i.h.bf16 %v720_v12  ;;  %v721_v16 = vunpack.i.l.bf16 %v720_v12 }
  0x85   : > { %v290_v27 = vsel %vm289_vm1, %v721_v16, %v722_v15 }
  0x8a   : > { %v735_v13 = vpop.permute.xlu2 %734 }
  0x8b   : > { %v737_v23 = vunpack.i.h.bf16 %v735_v13  ;;  %v736_v24 = vunpack.i.l.bf16 %v735_v13 }
  0x8d   : > { %v283_v30 = vsel %vm282_vm2, %v736_v24, %v737_v23 }
  0x92   : > { %v695_v14 = vpop.permute.xlu0 %694  ;;  %v750_v17 = vpop.permute.xlu2 %749 }
  0x93   : > { %v697_v18 = vunpack.i.h.bf16 %v695_v14  ;;  %v696_v19 = vunpack.i.l.bf16 %v695_v14  ;;  %v705_v20 = vpop.permute.xlu1 %704  ;;  %v752_v28 = vunpack.i.h.bf16 %v750_v17  ;;  %v751_v29 = vunpack.i.l.bf16 %v750_v17  ;;  %v489_v14 = vld [vmem:[%s999_s2] sm:$0xf] }
  0x94   : > { %v707_v21 = vunpack.i.h.bf16 %v705_v20  ;;  %v706_v22 = vunpack.i.l.bf16 %v705_v20 }
  0x95   : > { %v461_v25 = vsel %vm296_vm0, %v696_v19, %v697_v18  ;;  %v276_v34 = vsel %vm275_vm3, %v751_v29, %v752_v28  ;;  %v862_v18 = vmov 0  }
  0x96   : > { %475 = vmatpush.msra.mxu2 %v461_v25  ;;  %v297_v26 = vsel %vm296_vm0, %v706_v22, %v707_v21  ;;  %813 = vset.pattern.permute.xlu0 %v862_v18 }
  0x97   : > { %393 = vmatpush.msra.mxu1 %v297_v26  ;;  %492 = vperm.xlu0 %813, %v489_v14  }
  0x99   : > { %394 = vmatpush.msra.mxu1 %v290_v27 }
  0x9a   : > { %v700_v33 = vpop.permute.xlu0 %699  ;;  %v765_v35 = vpop.permute.xlu2 %764 }
  0x9b   : > { %v702_v36 = vunpack.i.h.bf16 %v700_v33  ;;  %v701_v37 = vunpack.i.l.bf16 %v700_v33  ;;  %v710_v38 = vpop.permute.xlu1 %709  ;;  %395 = vmatpush.msra.mxu1 %v283_v30  ;;  %v767_v39 = vunpack.i.h.bf16 %v765_v35  ;;  %v766_v40 = vunpack.i.l.bf16 %v765_v35 }
  0x9c   : > { %v712_v41 = vunpack.i.h.bf16 %v710_v38  ;;  %v711_v42 = vunpack.i.l.bf16 %v710_v38 }
  0x9d   : > { %v455_v43 = vsel %vm289_vm1, %v701_v37, %v702_v36  ;;  %396 = vmatpush.msra.mxu1 %v276_v34  ;;  %v269_v44 = vsel %vm268_vm4, %v766_v40, %v767_v39  ;;  %v633_v37 = vld [vmem:[%s998_s1 + $0x8] sm:$0xf] }
  0x9e   : > { %476 = vmatpush.msra.mxu2 %v455_v43  ;;  %v355_v45 = vsel %vm296_vm0, %v711_v42, %v712_v41 }
  0x9f   : > { %370 = vmatpush.msra.mxu0 %v355_v45  ;;  %397 = vmatpush.msra.mxu1 %v269_v44 }
  0xa0   : > { %477 = vmatpush.msra.mxu2 %v449_v46 }
  0xa2   : > { %v725_v47 = vpop.permute.xlu0 %724  ;;  %v780_v48 = vpop.permute.xlu2 %779 }
  0xa3   : > { %v727_v49 = vunpack.i.h.bf16 %v725_v47  ;;  %v726_v50 = vunpack.i.l.bf16 %v725_v47  ;;  %v730_v51 = vpop.permute.xlu1 %729  ;;  %v782_v52 = vunpack.i.h.bf16 %v780_v48  ;;  %v781_v53 = vunpack.i.l.bf16 %v780_v48 }
  0xa4   : > { %v732_v54 = vunpack.i.h.bf16 %v730_v51  ;;  %v731_v55 = vunpack.i.l.bf16 %v730_v51 }
  0xa5   : > { %v349_v56 = vsel %vm289_vm1, %v726_v50, %v727_v49  ;;  %v262_v57 = vsel %vm261_vm5, %v781_v53, %v782_v52  ;;  %v628_v49 = vld [vmem:[%s998_s1 + $0x4] sm:$0xf] }
  0xa6   : > { %371 = vmatpush.msra.mxu0 %v349_v56  ;;  %v443_v58 = vsel %vm275_vm3, %v731_v55, %v732_v54  ;;  %398 = vmatpush.msra.mxu1 %v262_v57 }
  0xa7   : > { %478 = vmatpush.msra.mxu2 %v443_v58 }
  0xaa   : > { %v740_v59 = vpop.permute.xlu0 %739  ;;  %v795_v60 = vpop.permute.xlu2 %794 }
  0xab   : > { %v742_v61 = vunpack.i.h.bf16 %v740_v59  ;;  %v741_v62 = vunpack.i.l.bf16 %v740_v59  ;;  %v745_v63 = vpop.permute.xlu1 %744  ;;  %v797_v0 = vunpack.i.h.bf16 %v795_v60  ;;  %v796_v1 = vunpack.i.l.bf16 %v795_v60 }
  0xac   : > { %v747_v3 = vunpack.i.h.bf16 %v745_v63  ;;  %v746_v4 = vunpack.i.l.bf16 %v745_v63 }
  0xad   : > { %v343_v6 = vsel %vm282_vm2, %v741_v62, %v742_v61  ;;  %v255_v7 = vsel %vm254_vm6, %v796_v1, %v797_v0 }
  0xae   : > { %372 = vmatpush.msra.mxu0 %v343_v6  ;;  %v437_v9 = vsel %vm268_vm4, %v746_v4, %v747_v3  ;;  %399 = vmatpush.msra.mxu1 %v255_v7 }
  0xaf   : > { %479 = vmatpush.msra.mxu2 %v437_v9 }
  0xb2   : > { %v755_v10 = vpop.permute.xlu0 %754  ;;  %v810_v36 = vpop.permute.xlu2 %809 }
  0xb3   : > { %v757_v11 = vunpack.i.h.bf16 %v755_v10  ;;  %v756_v12 = vunpack.i.l.bf16 %v755_v10  ;;  %v760_v13 = vpop.permute.xlu1 %759  ;;  %v812_v38 = vunpack.i.h.bf16 %v810_v36  ;;  %v811_v39 = vunpack.i.l.bf16 %v810_v36 }
  0xb4   : > { %v762_v15 = vunpack.i.h.bf16 %v760_v13  ;;  %v761_v16 = vunpack.i.l.bf16 %v760_v13 }
  0xb5   : > { %v337_v17 = vsel %vm275_vm3, %v756_v12, %v757_v11  ;;  %v313_v47 = vsel %vm247_vm7, %v811_v39, %v812_v38 }
  0xb6   : > { %373 = vmatpush.msra.mxu0 %v337_v17  ;;  %v431_v19 = vsel %vm261_vm5, %v761_v16, %v762_v15 }
  0xb7   : > { %480 = vmatpush.msra.mxu2 %v431_v19 }
  0xba   : > { %v770_v20 = vpop.permute.xlu0 %769 }
  0xbb   : > { %v772_v21 = vunpack.i.h.bf16 %v770_v20  ;;  %v771_v22 = vunpack.i.l.bf16 %v770_v20  ;;  %v775_v23 = vpop.permute.xlu1 %774 }
  0xbc   : > { %v777_v24 = vunpack.i.h.bf16 %v775_v23  ;;  %v776_v25 = vunpack.i.l.bf16 %v775_v23 }
  0xbd   : > { %v331_v26 = vsel %vm268_vm4, %v771_v22, %v772_v21 }
  0xbe   : > { %374 = vmatpush.msra.mxu0 %v331_v26  ;;  %v425_v27 = vsel %vm254_vm6, %v776_v25, %v777_v24 }
  0xbf   : > { %481 = vmatpush.msra.mxu2 %v425_v27 }
  0xc2   : > { %v785_v28 = vpop.permute.xlu0 %784 }
  0xc3   : > { %v787_v29 = vunpack.i.h.bf16 %v785_v28  ;;  %v786_v30 = vunpack.i.l.bf16 %v785_v28  ;;  %v790_v31 = vpop.permute.xlu1 %789 }
  0xc4   : > { %v792_v32 = vunpack.i.h.bf16 %v790_v31  ;;  %v791_v33 = vunpack.i.l.bf16 %v790_v31 }
  0xc5   : > { %v325_v34 = vsel %vm261_vm5, %v786_v30, %v787_v29 }
  0xc6   : > { %375 = vmatpush.msra.mxu0 %v325_v34  ;;  %v419_v35 = vsel %vm247_vm7, %v791_v33, %v792_v32 }
  0xc7   : > { %482 = vmatpush.msra.mxu2 %v419_v35 }
  0xc9   : > { %483 = vmatpush.msra.mxu2 %v929_v2  ;;  %v299_v2 = vld [vmem:[%s998_s1] sm:$0xf] }
  0xca   : > { %v800_v40 = vpop.permute.xlu0 %799  ;;  %634 = vmatmul.msk.f32.vlgmr.msra.gmra.mxu2 %vm359_vm8, %v633_v37 }
  0xcb   : > { %v802_v41 = vunpack.i.h.bf16 %v800_v40  ;;  %v801_v42 = vunpack.i.l.bf16 %v800_v40  ;;  %v805_v43 = vpop.permute.xlu1 %804 }
  0xcc   : > { %v807_v44 = vunpack.i.h.bf16 %v805_v43  ;;  %v806_v45 = vunpack.i.l.bf16 %v805_v43 }
  0xcd   : > { %v319_v46 = vsel %vm254_vm6, %v801_v42, %v802_v41 }
  0xce   : > { %376 = vmatpush.msra.mxu0 %v319_v46  ;;  %v248_v48 = vsel %vm247_vm7, %v806_v45, %v807_v44 }
  0xcf   : > { %400 = vmatpush.msra.mxu1 %v248_v48 }
  0xd0   : > { %377 = vmatpush.msra.mxu0 %v313_v47 }
  0xd1   : > { %401 = vmatpush.msra.mxu1 %v932_v5 }
  0xd2   : > { %378 = vmatpush.msra.mxu0 %v936_v8  ;;  %630 = vmatmul.msk.f32.vlgmr.msra.gmra.mxu1 %vm359_vm8, %v299_v2 }
  0xd3   : > { %629 = vmatmul.msk.f32.vlgmr.msra.gmra.mxu0 %vm359_vm8, %v628_v49 }
 0x109   : > { %v493_v54 = vpop.permute.xlu0 %492 }
 0x14d   : > { %v485_v52 = vpop.f32.mrf.mxu2 }
 0x14f   : > { %v403_v50 = vpop.f32.mrf.mxu1 }
 0x150   : > { %v380_v51 = vpop.f32.mrf.mxu0 }
 0x151   : > { %v404_v53 = vadd.f32 %v403_v50, %v380_v51 }
 0x153   : > { %v488_v55 = vadd.f32 %v485_v52, %v404_v53 }
 0x155   : > { %v495_v56 = vadd.f32 %v493_v54, %v488_v55 }
 0x157   : > { %vm496_vm9 = vcmp.gt.f32.partialorder %v495_v56, 0.0  ;;  %v497_v57 = vmul.f32 0.1, %v495_v56 }
 0x159   : > { %v498_v58 = vsel %vm496_vm9, %v495_v56, %v497_v57 }
 0x15a   : > { %499 = vst [vmem:[%s924_s8] sm:$0xf] %v498_v58 }
 0x15b PF: > { %s13_s16 = sadd.s32 1, %s852_s16   ;;  %s1001_s12 = smov %s844_s14 }
 0x15c   : > { %p10_p10 = scmp.ge.s32.totalorder %s13_s16, 14   ;;  %s1002_s13 = smov %s848_s15 }
 0x15d   : > { %s1003_s14 = smov %s1006_s17  ;;  %s1004_s15 = smov %s1010_s18 }
 0x15e   :  { %12 = sbr.rel (!%p10_p10) target bundleno = 3 (0x3), region = 72 }

</bundles_post_ra>
